<compile_context>
chip_gen: v7x
topology: tpu7x:2x2x1
jax: 0.10.0
libtpu: 0.0.40
codegen_flags: <defaults>
</compile_context>

<pallas_src>
import numpy as np
import jax
import jax.numpy as jnp
from jax import lax
from jax.experimental import pallas as pl
from jax.experimental.pallas import tpu as pltpu

NEG_SLOPE = 0.01   # nn.LeakyReLU default
BN_EPS = 1e-5      # nn.BatchNorm2d default

# (kh, kw, pad, dil) of the three spatial convs, in module order (conv2, conv3, conv4).
_CONV_GEOM = ((3, 3, 1, 1), (3, 3, 2, 2), (2, 2, 1, 2))


def _leaky(v):
    return jnp.where(v >= 0, v, NEG_SLOPE * v)


def _tap_offsets(kh, kw, pad, dil):
    return [(i * dil - pad, j * dil - pad) for i in range(kh) for j in range(kw)]


def _tap_masks_np(H, W):
    """{0,1} boundary masks for every conv tap (9 + 9 + 4 = 22 rows); batch-invariant."""
    hh, ww = np.meshgrid(np.arange(H), np.arange(W), indexing="ij")
    rows = []
    for geom in _CONV_GEOM:
        for oh, ow in _tap_offsets(*geom):
            m = (hh >= -oh) & (hh < H - oh) & (ww >= -ow) & (ww < W - ow)
            rows.append(m.reshape(-1).astype(np.float32))
    return np.stack(rows)                     # (22, H*W)


def _pool_matrix_np(H, W, P2):
    """{0,1} selection matrix for AvgPool2d(2,2); scale 0.25 applied after the dot.
    Padded to P2 >= 128 columns so the pooled output store is lane-dense."""
    W2 = W // 2
    m = np.zeros((H * W, P2), np.float32)
    for h in range(H):
        for w in range(W):
            m[h * W + w, (h // 2) * W2 + (w // 2)] = 1.0
    return m


def _make_kernel(H, W, Cp, Cout):
    HW = H * W
    taps2 = _tap_offsets(*_CONV_GEOM[0])
    taps3 = _tap_offsets(*_CONV_GEOM[1])
    taps4 = _tap_offsets(*_CONV_GEOM[2])
    base3 = len(taps2)
    base4 = base3 + len(taps3)
    bf = jnp.bfloat16

    def kernel(x_ref, w12_ref, w3_ref, w4_ref, w5_ref,
               b12_ref, b345_ref, bns_ref, bnt_ref, mask_ref, pool_ref,
               outB_ref, outA_ref, patch_ref, cat_ref):

        def bn(v, k):
            # eval-mode BatchNorm: per-channel affine (running stats folded).
            return v * bns_ref[k] + bnt_ref[k]

        def build_patch(v, taps, mask_base, C):
            # im2col via XLU lane rolls + resident {0,1} boundary masks, written
            # straight into the reusable VMEM patch scratch (no concatenate copies).
            for t, (oh, ow) in enumerate(taps):
                if oh == 0 and ow == 0:
                    tap = v
                else:
                    s = oh * W + ow
                    tap = pltpu.roll(v, (-s) % HW, axis=1) * mask_ref[mask_base + t]
                patch_ref[t * C:(t + 1) * C, :] = tap
            return patch_ref[0:len(taps) * C, :]           # (ntaps*C, HW) f32

        def conv_dot(w_ref, patch, bias):
            return jnp.dot(w_ref[...], patch.astype(bf),
                           preferred_element_type=jnp.float32) + bias

        x = x_ref[0]                                        # (Cp, HW) f32

        # conv1 (1x1 shortcut) fused into conv2 (3x3, pad 1): one MXU dot.
        # Rows [0, Cout) = conv2 pre-act, rows [Cout, 2*Cout) = conv1 pre-act.
        z12 = conv_dot(w12_ref, build_patch(x, taps2, 0, Cp), b12_ref[...])
        resA1 = bn(_leaky(z12[0:Cout]), 0)                  # bn1(act2(conv2(x)))
        shortcut = _leaky(z12[Cout:2 * Cout])               # act1(conv1(x))
        cat_ref[0:Cout, :] = resA1

        # conv3: 3x3, dilation 2, padding 2
        resA2 = bn(_leaky(conv_dot(w3_ref, build_patch(resA1, taps3, base3, Cout),
                                   b345_ref[0])), 1)
        cat_ref[Cout:2 * Cout, :] = resA2

        # conv4: 2x2, dilation 2, padding 1
        resA3 = bn(_leaky(conv_dot(w4_ref, build_patch(resA2, taps4, base4, Cout),
                                   b345_ref[1])), 2)
        cat_ref[2 * Cout:3 * Cout, :] = resA3

        # conv5: 1x1 over channel concat -> single matmul with K = 3*Cout
        resA5 = bn(_leaky(conv_dot(w5_ref, cat_ref[...], b345_ref[2])), 3)

        resA_out = shortcut + resA5                          # (Cout, HW) f32
        outA_ref[0] = resA_out

        # AvgPool2d(2,2): single-pass bf16 dot against the resident {0,1} selection
        # matrix, exact *0.25 afterwards.  Dropout2d is eval-mode identity.
        pooled = jnp.dot(resA_out.astype(bf), pool_ref[...],
                         preferred_element_type=jnp.float32) * 0.25
        outB_ref[0] = pooled

    return kernel


def _const_index_map(ndim):
    def index_map(n):
        return (0,) * ndim
    return index_map


def resblock_bev(x, params):
    """x: (N, Cin, H, W) NCHW (PyTorch layout). Returns (resB, resA) in NCHW."""
    N, Cin, H, W = x.shape
    Cout = params["w1"].shape[0]
    assert H % 2 == 0 and W % 2 == 0
    assert Cout % 8 == 0, "kernel assumes Cout is a multiple of the 8-row sublane tile"
    HW = H * W
    H2, W2 = H // 2, W // 2
    HW2 = H2 * W2
    P2 = max(128, -(-HW2 // 128) * 128)        # lane-dense pooled output width
    Cp = ((Cin + 7) // 8) * 8                  # pad input channels to a sublane tile
    Cmax = max(Cp, Cout)
    bf = jnp.bfloat16

    x_flat = x.reshape(N, Cin, HW)
    w1 = params["w1"]                          # (Cout, Cin)
    w2 = params["w2"]                          # (Cout, 3, 3, Cin)
    if Cp != Cin:
        pc = Cp - Cin
        x_flat = jnp.pad(x_flat, ((0, 0), (0, pc), (0, 0)))
        w1 = jnp.pad(w1, ((0, 0), (0, pc)))
        w2 = jnp.pad(w2, ((0, 0), (0, 0), (0, 0), (0, pc)))

    # Fused conv1+conv2 weight: rows [0, Cout) = conv2 (tap-major, channel-minor),
    # rows [Cout, 2*Cout) = conv1 embedded in the centre-tap (tap index 4) columns.
    w2_flat = w2.reshape(Cout, 9 * Cp)
    w1_embed = jnp.zeros((Cout, 9 * Cp), jnp.float32).at[:, 4 * Cp:4 * Cp + Cp].set(w1)
    w12 = jnp.concatenate([w2_flat, w1_embed], axis=0).astype(bf)   # (2*Cout, 9*Cp)
    w3k = params["w3"].reshape(Cout, 9 * Cout).astype(bf)
    w4k = params["w4"].reshape(Cout, 4 * Cout).astype(bf)
    w5k = params["w5"].astype(bf)                                   # (Cout, 3*Cout)

    b12 = jnp.concatenate([params["b2"], params["b1"]]).reshape(2 * Cout, 1)
    b345 = jnp.stack([params["b3"], params["b4"], params["b5"]]).reshape(3, Cout, 1)
    bn_s = jnp.stack([params["s1"], params["s2"],
                      params["s3"], params["s4"]]).reshape(4, Cout, 1)
    bn_t = jnp.stack([params["t1"], params["t2"],
                      params["t3"], params["t4"]]).reshape(4, Cout, 1)

    # Batch-invariant constants, resident across the whole grid (one DMA each).
    masks = jnp.asarray(_tap_masks_np(H, W)[:, None, :], jnp.float32)   # (22, 1, HW)
    pool_m = jnp.asarray(_pool_matrix_np(H, W, P2), bf)                 # (HW, P2)

    ins = [x_flat, w12, w3k, w4k, w5k, b12, b345, bn_s, bn_t, masks, pool_m]
    in_specs = [pl.BlockSpec((1, Cp, HW), lambda n: (n, 0, 0))]
    in_specs += [pl.BlockSpec(a.shape, _const_index_map(a.ndim)) for a in ins[1:]]

    out_shape = (jax.ShapeDtypeStruct((N, Cout, P2), jnp.float32),    # resB (pooled)
                 jax.ShapeDtypeStruct((N, Cout, HW), jnp.float32))    # resA
    out_specs = (pl.BlockSpec((1, Cout, P2), lambda n: (n, 0, 0)),
                 pl.BlockSpec((1, Cout, HW), lambda n: (n, 0, 0)))

    resB_flat, resA_flat = pl.pallas_call(
        _make_kernel(H, W, Cp, Cout),
        grid=(N,),
        in_specs=in_specs,
        out_specs=out_specs,
        out_shape=out_shape,
        scratch_shapes=[pltpu.VMEM((9 * Cmax, HW), jnp.float32),   # reusable im2col patch
                        pltpu.VMEM((3 * Cout, HW), jnp.float32)],  # concat buffer for conv5
        compiler_params=pltpu.CompilerParams(
            dimension_semantics=("parallel",)),    # batch axis -> 2 TCs on v7x
    )(*ins)

    resB = resB_flat[:, :, :HW2].reshape(N, Cout, H2, W2)
    return resB, resA_flat.reshape(N, Cout, H, W)


def init_params(key, Cin, Cout):
    ks = jax.random.split(key, 16)

    def u(k, shape, scale):
        return jax.random.uniform(k, shape, jnp.float32, -scale, scale)

    p = {}
    # weight layout: (Cout, kh, kw, Cin)  (PyTorch OIHW modulo a permutation)
    p["w1"] = u(ks[0], (Cout, Cin), 1.0 / np.sqrt(Cin))
    p["b1"] = u(ks[1], (Cout,), 1.0 / np.sqrt(Cin))
    p["w2"] = u(ks[2], (Cout, 3, 3, Cin), 1.0 / np.sqrt(Cin * 9))
    p["b2"] = u(ks[3], (Cout,), 1.0 / np.sqrt(Cin * 9))
    p["w3"] = u(ks[4], (Cout, 3, 3, Cout), 1.0 / np.sqrt(Cout * 9))
    p["b3"] = u(ks[5], (Cout,), 1.0 / np.sqrt(Cout * 9))
    p["w4"] = u(ks[6], (Cout, 2, 2, Cout), 1.0 / np.sqrt(Cout * 4))
    p["b4"] = u(ks[7], (Cout,), 1.0 / np.sqrt(Cout * 4))
    p["w5"] = u(ks[8], (Cout, 3 * Cout), 1.0 / np.sqrt(3 * Cout))
    p["b5"] = u(ks[9], (Cout,), 1.0 / np.sqrt(3 * Cout))
    # eval-mode BatchNorm folded into per-channel scale/shift
    for i, kk in enumerate(ks[10:14], start=1):
        k1, k2, k3, k4 = jax.random.split(kk, 4)
        gamma = jax.random.uniform(k1, (Cout,), jnp.float32, 0.5, 1.5)
        beta = jax.random.uniform(k2, (Cout,), jnp.float32, -0.1, 0.1)
        mean = jax.random.uniform(k3, (Cout,), jnp.float32, -0.1, 0.1)
        var = jax.random.uniform(k4, (Cout,), jnp.float32, 0.5, 1.5)
        scale = gamma / jnp.sqrt(var + BN_EPS)
        p[f"s{i}"] = scale
        p[f"t{i}"] = beta - mean * scale
    return p


def reference(x, p):
    # pure-JAX reference mirroring the PyTorch forward (eval-mode BN/dropout).
    # Conv operands cast to bf16 with f32 accumulation, matching the kernel's MXU path.
    bf = jnp.bfloat16
    N, Cin, H, W = x.shape
    Cout = p["w1"].shape[0]

    def conv(v, w, b, pad, dil):
        # w: (Cout, kh, kw, Cin) -> HWIO
        w_hwio = jnp.transpose(w, (1, 2, 3, 0)).astype(bf)
        out = lax.conv_general_dilated(
            v.astype(bf), w_hwio, window_strides=(1, 1),
            padding=[(pad, pad), (pad, pad)], rhs_dilation=(dil, dil),
            dimension_numbers=("NCHW", "HWIO", "NCHW"),
            preferred_element_type=jnp.float32)
        return out + b.reshape(1, Cout, 1, 1)

    def bn(v, s, t):
        return v * s.reshape(1, Cout, 1, 1) + t.reshape(1, Cout, 1, 1)

    shortcut = _leaky(conv(x, p["w1"].reshape(Cout, 1, 1, Cin), p["b1"], 0, 1))
    resA1 = bn(_leaky(conv(x, p["w2"], p["b2"], 1, 1)), p["s1"], p["t1"])
    resA2 = bn(_leaky(conv(resA1, p["w3"], p["b3"], 2, 2)), p["s2"], p["t2"])
    resA3 = bn(_leaky(conv(resA2, p["w4"], p["b4"], 1, 2)), p["s3"], p["t3"])
    concat = jnp.concatenate([resA1, resA2, resA3], axis=1)
    resA5 = bn(_leaky(conv(concat, p["w5"].reshape(Cout, 1, 1, 3 * Cout),
                           p["b5"], 0, 1)), p["s4"], p["t4"])
    resA = shortcut + resA5
    resB = resA.reshape(N, Cout, H // 2, 2, W // 2, 2).mean(axis=(3, 5))
    return resB, resA


if __name__ == "__main__":
    key = jax.random.PRNGKey(0)
    kx, kp = jax.random.split(key)
    N, Cin, Cout, H, W = 2, 4, 8, 16, 16          # NCHW input: (2, 4, 16, 16)
    x = jax.random.normal(kx, (N, Cin, H, W), jnp.float32)
    params = init_params(kp, Cin, Cout)

    resB, resA = jax.block_until_ready(resblock_bev(x, params))

    refB, refA = reference(x, params)
    np.testing.assert_allclose(np.asarray(resA), np.asarray(refA), rtol=5e-3, atol=5e-3)
    # Looser tolerance for the pooled output: the kernel pools through a single-pass
    # bf16 MXU dot (resA rounded to bf16), while the reference pools in exact f32.
    np.testing.assert_allclose(np.asarray(resB), np.asarray(refB), rtol=1e-2, atol=2e-2)
    print("KERNEL_OK")
</pallas_src>

<mosaic_0001>
module attributes {stable_mosaic.version = 11 : i64} {
  func.func @kernel(%arg0: i32, %arg1: memref<1x8x256xf32, #tpu.memory_space<vmem>>, %arg2: memref<16x72xbf16, #tpu.memory_space<vmem>>, %arg3: memref<8x72xbf16, #tpu.memory_space<vmem>>, %arg4: memref<8x32xbf16, #tpu.memory_space<vmem>>, %arg5: memref<8x24xbf16, #tpu.memory_space<vmem>>, %arg6: memref<16x1xf32, #tpu.memory_space<vmem>>, %arg7: memref<3x8x1xf32, #tpu.memory_space<vmem>>, %arg8: memref<4x8x1xf32, #tpu.memory_space<vmem>>, %arg9: memref<4x8x1xf32, #tpu.memory_space<vmem>>, %arg10: memref<22x1x256xf32, #tpu.memory_space<vmem>>, %arg11: memref<256x128xbf16, #tpu.memory_space<vmem>>, %arg12: memref<1x8x128xf32, #tpu.memory_space<vmem>>, %arg13: memref<1x8x256xf32, #tpu.memory_space<vmem>>, %arg14: memref<72x256xf32, #tpu.memory_space<vmem>>, %arg15: memref<24x256xf32, #tpu.memory_space<vmem>>) attributes {dimension_semantics = [#tpu.dimension_semantics<parallel>], iteration_bounds = array<i64: 2>, scalar_prefetch = 0 : i64, scratch_operands = 2 : i64, tpu.core_type = #tpu.core_type<tc>, window_params = [{transform_indices = @transform_0, window_bounds = array<i64: 1, 8, 256>}, {pipeline_mode = #tpu.pipeline_mode<synchronous>, transform_indices = @transform_1, window_bounds = array<i64: 16, 72>}, {pipeline_mode = #tpu.pipeline_mode<synchronous>, transform_indices = @transform_2, window_bounds = array<i64: 8, 72>}, {pipeline_mode = #tpu.pipeline_mode<synchronous>, transform_indices = @transform_3, window_bounds = array<i64: 8, 32>}, {pipeline_mode = #tpu.pipeline_mode<synchronous>, transform_indices = @transform_4, window_bounds = array<i64: 8, 24>}, {pipeline_mode = #tpu.pipeline_mode<synchronous>, transform_indices = @transform_5, window_bounds = array<i64: 16, 1>}, {pipeline_mode = #tpu.pipeline_mode<synchronous>, transform_indices = @transform_6, window_bounds = array<i64: 3, 8, 1>}, {pipeline_mode = #tpu.pipeline_mode<synchronous>, transform_indices = @transform_7, window_bounds = array<i64: 4, 8, 1>}, {pipeline_mode = #tpu.pipeline_mode<synchronous>, transform_indices = @transform_8, window_bounds = array<i64: 4, 8, 1>}, {pipeline_mode = #tpu.pipeline_mode<synchronous>, transform_indices = @transform_9, window_bounds = array<i64: 22, 1, 256>}, {pipeline_mode = #tpu.pipeline_mode<synchronous>, transform_indices = @transform_10, window_bounds = array<i64: 256, 128>}, {transform_indices = @transform_11, window_bounds = array<i64: 1, 8, 128>}, {transform_indices = @transform_12, window_bounds = array<i64: 1, 8, 256>}]} {
    %c0 = arith.constant 0 : index
    %c0_0 = arith.constant 0 : index
    %c0_1 = arith.constant 0 : index
    %0 = vector.load %arg1[%c0, %c0_0, %c0_1] : memref<1x8x256xf32, #tpu.memory_space<vmem>>, vector<1x8x256xf32>
    %1 = vector.shape_cast %0 : vector<1x8x256xf32> to vector<8x256xf32>
    %c17_i32 = arith.constant 17 : i32
    %2 = tpu.dynamic_rotate %1 by %c17_i32 dim 1 : vector<8x256xf32>, i32 -> vector<8x256xf32>
    %c0_2 = arith.constant 0 : index
    %c0_3 = arith.constant 0 : index
    %c0_4 = arith.constant 0 : index
    %3 = vector.load %arg10[%c0_2, %c0_3, %c0_4] : memref<22x1x256xf32, #tpu.memory_space<vmem>>, vector<1x1x256xf32>
    %4 = vector.shape_cast %3 : vector<1x1x256xf32> to vector<1x256xf32>
    %5 = vector.broadcast %4 : vector<1x256xf32> to vector<8x256xf32>
    %6 = arith.mulf %2, %5 : vector<8x256xf32>
    %c0_5 = arith.constant 0 : index
    %c0_6 = arith.constant 0 : index
    %7 = vector.load %arg14[%c0_5, %c0_6] : memref<72x256xf32, #tpu.memory_space<vmem>>, vector<8x256xf32>
    tpu.vector_store %arg14[%c0_5, %c0_6], %6 {strides = array<i32>} : memref<72x256xf32, #tpu.memory_space<vmem>>, vector<8x256xf32>,
    %c16_i32 = arith.constant 16 : i32
    %8 = tpu.dynamic_rotate %1 by %c16_i32 dim 1 : vector<8x256xf32>, i32 -> vector<8x256xf32>
    %c1 = arith.constant 1 : index
    %c0_7 = arith.constant 0 : index
    %c0_8 = arith.constant 0 : index
    %9 = vector.load %arg10[%c1, %c0_7, %c0_8] : memref<22x1x256xf32, #tpu.memory_space<vmem>>, vector<1x1x256xf32>
    %10 = vector.shape_cast %9 : vector<1x1x256xf32> to vector<1x256xf32>
    %11 = vector.broadcast %10 : vector<1x256xf32> to vector<8x256xf32>
    %12 = arith.mulf %8, %11 : vector<8x256xf32>
    %c8 = arith.constant 8 : index
    %c0_9 = arith.constant 0 : index
    %13 = vector.load %arg14[%c8, %c0_9] : memref<72x256xf32, #tpu.memory_space<vmem>>, vector<8x256xf32>
    tpu.vector_store %arg14[%c8, %c0_9], %12 {strides = array<i32>} : memref<72x256xf32, #tpu.memory_space<vmem>>, vector<8x256xf32>,
    %c15_i32 = arith.constant 15 : i32
    %14 = tpu.dynamic_rotate %1 by %c15_i32 dim 1 : vector<8x256xf32>, i32 -> vector<8x256xf32>
    %c2 = arith.constant 2 : index
    %c0_10 = arith.constant 0 : index
    %c0_11 = arith.constant 0 : index
    %15 = vector.load %arg10[%c2, %c0_10, %c0_11] : memref<22x1x256xf32, #tpu.memory_space<vmem>>, vector<1x1x256xf32>
    %16 = vector.shape_cast %15 : vector<1x1x256xf32> to vector<1x256xf32>
    %17 = vector.broadcast %16 : vector<1x256xf32> to vector<8x256xf32>
    %18 = arith.mulf %14, %17 : vector<8x256xf32>
    %c16 = arith.constant 16 : index
    %c0_12 = arith.constant 0 : index
    %19 = vector.load %arg14[%c16, %c0_12] : memref<72x256xf32, #tpu.memory_space<vmem>>, vector<8x256xf32>
    tpu.vector_store %arg14[%c16, %c0_12], %18 {strides = array<i32>} : memref<72x256xf32, #tpu.memory_space<vmem>>, vector<8x256xf32>,
    %c1_i32 = arith.constant 1 : i32
    %20 = tpu.dynamic_rotate %1 by %c1_i32 dim 1 : vector<8x256xf32>, i32 -> vector<8x256xf32>
    %c3 = arith.constant 3 : index
    %c0_13 = arith.constant 0 : index
    %c0_14 = arith.constant 0 : index
    %21 = vector.load %arg10[%c3, %c0_13, %c0_14] : memref<22x1x256xf32, #tpu.memory_space<vmem>>, vector<1x1x256xf32>
    %22 = vector.shape_cast %21 : vector<1x1x256xf32> to vector<1x256xf32>
    %23 = vector.broadcast %22 : vector<1x256xf32> to vector<8x256xf32>
    %24 = arith.mulf %20, %23 : vector<8x256xf32>
    %c24 = arith.constant 24 : index
    %c0_15 = arith.constant 0 : index
    %25 = vector.load %arg14[%c24, %c0_15] : memref<72x256xf32, #tpu.memory_space<vmem>>, vector<8x256xf32>
    tpu.vector_store %arg14[%c24, %c0_15], %24 {strides = array<i32>} : memref<72x256xf32, #tpu.memory_space<vmem>>, vector<8x256xf32>,
    %c32 = arith.constant 32 : index
    %c0_16 = arith.constant 0 : index
    %26 = vector.load %arg14[%c32, %c0_16] : memref<72x256xf32, #tpu.memory_space<vmem>>, vector<8x256xf32>
    tpu.vector_store %arg14[%c32, %c0_16], %1 {strides = array<i32>} : memref<72x256xf32, #tpu.memory_space<vmem>>, vector<8x256xf32>,
    %c255_i32 = arith.constant 255 : i32
    %27 = tpu.dynamic_rotate %1 by %c255_i32 dim 1 : vector<8x256xf32>, i32 -> vector<8x256xf32>
    %c5 = arith.constant 5 : index
    %c0_17 = arith.constant 0 : index
    %c0_18 = arith.constant 0 : index
    %28 = vector.load %arg10[%c5, %c0_17, %c0_18] : memref<22x1x256xf32, #tpu.memory_space<vmem>>, vector<1x1x256xf32>
    %29 = vector.shape_cast %28 : vector<1x1x256xf32> to vector<1x256xf32>
    %30 = vector.broadcast %29 : vector<1x256xf32> to vector<8x256xf32>
    %31 = arith.mulf %27, %30 : vector<8x256xf32>
    %c40 = arith.constant 40 : index
    %c0_19 = arith.constant 0 : index
    %32 = vector.load %arg14[%c40, %c0_19] : memref<72x256xf32, #tpu.memory_space<vmem>>, vector<8x256xf32>
    tpu.vector_store %arg14[%c40, %c0_19], %31 {strides = array<i32>} : memref<72x256xf32, #tpu.memory_space<vmem>>, vector<8x256xf32>,
    %c241_i32 = arith.constant 241 : i32
    %33 = tpu.dynamic_rotate %1 by %c241_i32 dim 1 : vector<8x256xf32>, i32 -> vector<8x256xf32>
    %c6 = arith.constant 6 : index
    %c0_20 = arith.constant 0 : index
    %c0_21 = arith.constant 0 : index
    %34 = vector.load %arg10[%c6, %c0_20, %c0_21] : memref<22x1x256xf32, #tpu.memory_space<vmem>>, vector<1x1x256xf32>
    %35 = vector.shape_cast %34 : vector<1x1x256xf32> to vector<1x256xf32>
    %36 = vector.broadcast %35 : vector<1x256xf32> to vector<8x256xf32>
    %37 = arith.mulf %33, %36 : vector<8x256xf32>
    %c48 = arith.constant 48 : index
    %c0_22 = arith.constant 0 : index
    %38 = vector.load %arg14[%c48, %c0_22] : memref<72x256xf32, #tpu.memory_space<vmem>>, vector<8x256xf32>
    tpu.vector_store %arg14[%c48, %c0_22], %37 {strides = array<i32>} : memref<72x256xf32, #tpu.memory_space<vmem>>, vector<8x256xf32>,
    %c240_i32 = arith.constant 240 : i32
    %39 = tpu.dynamic_rotate %1 by %c240_i32 dim 1 : vector<8x256xf32>, i32 -> vector<8x256xf32>
    %c7 = arith.constant 7 : index
    %c0_23 = arith.constant 0 : index
    %c0_24 = arith.constant 0 : index
    %40 = vector.load %arg10[%c7, %c0_23, %c0_24] : memref<22x1x256xf32, #tpu.memory_space<vmem>>, vector<1x1x256xf32>
    %41 = vector.shape_cast %40 : vector<1x1x256xf32> to vector<1x256xf32>
    %42 = vector.broadcast %41 : vector<1x256xf32> to vector<8x256xf32>
    %43 = arith.mulf %39, %42 : vector<8x256xf32>
    %c56 = arith.constant 56 : index
    %c0_25 = arith.constant 0 : index
    %44 = vector.load %arg14[%c56, %c0_25] : memref<72x256xf32, #tpu.memory_space<vmem>>, vector<8x256xf32>
    tpu.vector_store %arg14[%c56, %c0_25], %43 {strides = array<i32>} : memref<72x256xf32, #tpu.memory_space<vmem>>, vector<8x256xf32>,
    %c239_i32 = arith.constant 239 : i32
    %45 = tpu.dynamic_rotate %1 by %c239_i32 dim 1 : vector<8x256xf32>, i32 -> vector<8x256xf32>
    %c8_26 = arith.constant 8 : index
    %c0_27 = arith.constant 0 : index
    %c0_28 = arith.constant 0 : index
    %46 = vector.load %arg10[%c8_26, %c0_27, %c0_28] : memref<22x1x256xf32, #tpu.memory_space<vmem>>, vector<1x1x256xf32>
    %47 = vector.shape_cast %46 : vector<1x1x256xf32> to vector<1x256xf32>
    %48 = vector.broadcast %47 : vector<1x256xf32> to vector<8x256xf32>
    %49 = arith.mulf %45, %48 : vector<8x256xf32>
    %c64 = arith.constant 64 : index
    %c0_29 = arith.constant 0 : index
    %50 = vector.load %arg14[%c64, %c0_29] : memref<72x256xf32, #tpu.memory_space<vmem>>, vector<8x256xf32>
    tpu.vector_store %arg14[%c64, %c0_29], %49 {strides = array<i32>} : memref<72x256xf32, #tpu.memory_space<vmem>>, vector<8x256xf32>,
    %c0_30 = arith.constant 0 : index
    %c0_31 = arith.constant 0 : index
    %51 = vector.load %arg14[%c0_30, %c0_31] : memref<72x256xf32, #tpu.memory_space<vmem>>, vector<72x256xf32>
    %c0_32 = arith.constant 0 : index
    %c0_33 = arith.constant 0 : index
    %52 = vector.load %arg6[%c0_32, %c0_33] : memref<16x1xf32, #tpu.memory_space<vmem>>, vector<16x1xf32>
    %c0_34 = arith.constant 0 : index
    %c0_35 = arith.constant 0 : index
    %53 = vector.load %arg2[%c0_34, %c0_35] : memref<16x72xbf16, #tpu.memory_space<vmem>>, vector<16x72xbf16>
    %54 = arith.truncf %51 : vector<72x256xf32> to vector<72x256xbf16>
    %cst = arith.constant dense<0.000000e+00> : vector<16x256xf32>
    %55 = tpu.matmul %53, %54, %cst {dimension_numbers = #tpu.dot_dimension_numbers<[1], [0], [0], [1], [0, 0, 1, 1], [], []>} : vector<16x72xbf16>, vector<72x256xbf16>, vector<16x256xf32> -> vector<16x256xf32>
    %56 = vector.broadcast %52 : vector<16x1xf32> to vector<16x256xf32>
    %57 = arith.addf %55, %56 : vector<16x256xf32>
    %58 = vector.extract_strided_slice %57 {offsets = [0, 0], sizes = [8, 256], strides = [1, 1]} : vector<16x256xf32> to vector<8x256xf32>
    %cst_36 = arith.constant 0.000000e+00 : f32
    %59 = vector.broadcast %cst_36 : f32 to vector<8x256xf32>
    %60 = arith.cmpf oge, %58, %59 : vector<8x256xf32>
    %cst_37 = arith.constant 0.00999999977 : f32
    %61 = vector.broadcast %cst_37 : f32 to vector<8x256xf32>
    %62 = arith.mulf %61, %58 : vector<8x256xf32>
    %63 = arith.select %60, %58, %62 : vector<8x256xi1>, vector<8x256xf32>
    %c0_38 = arith.constant 0 : index
    %c0_39 = arith.constant 0 : index
    %c0_40 = arith.constant 0 : index
    %64 = vector.load %arg8[%c0_38, %c0_39, %c0_40] : memref<4x8x1xf32, #tpu.memory_space<vmem>>, vector<1x8x1xf32>
    %65 = vector.shape_cast %64 : vector<1x8x1xf32> to vector<8x1xf32>
    %66 = vector.broadcast %65 : vector<8x1xf32> to vector<8x256xf32>
    %67 = arith.mulf %63, %66 : vector<8x256xf32>
    %c0_41 = arith.constant 0 : index
    %c0_42 = arith.constant 0 : index
    %c0_43 = arith.constant 0 : index
    %68 = vector.load %arg9[%c0_41, %c0_42, %c0_43] : memref<4x8x1xf32, #tpu.memory_space<vmem>>, vector<1x8x1xf32>
    %69 = vector.shape_cast %68 : vector<1x8x1xf32> to vector<8x1xf32>
    %70 = vector.broadcast %69 : vector<8x1xf32> to vector<8x256xf32>
    %71 = arith.addf %67, %70 : vector<8x256xf32>
    %72 = vector.extract_strided_slice %57 {offsets = [8, 0], sizes = [8, 256], strides = [1, 1]} : vector<16x256xf32> to vector<8x256xf32>
    %cst_44 = arith.constant 0.000000e+00 : f32
    %73 = vector.broadcast %cst_44 : f32 to vector<8x256xf32>
    %74 = arith.cmpf oge, %72, %73 : vector<8x256xf32>
    %cst_45 = arith.constant 0.00999999977 : f32
    %75 = vector.broadcast %cst_45 : f32 to vector<8x256xf32>
    %76 = arith.mulf %75, %72 : vector<8x256xf32>
    %77 = arith.select %74, %72, %76 : vector<8x256xi1>, vector<8x256xf32>
    %c0_46 = arith.constant 0 : index
    %c0_47 = arith.constant 0 : index
    %78 = vector.load %arg15[%c0_46, %c0_47] : memref<24x256xf32, #tpu.memory_space<vmem>>, vector<8x256xf32>
    tpu.vector_store %arg15[%c0_46, %c0_47], %71 {strides = array<i32>} : memref<24x256xf32, #tpu.memory_space<vmem>>, vector<8x256xf32>,
    %c34_i32 = arith.constant 34 : i32
    %79 = tpu.dynamic_rotate %71 by %c34_i32 dim 1 : vector<8x256xf32>, i32 -> vector<8x256xf32>
    %c9 = arith.constant 9 : index
    %c0_48 = arith.constant 0 : index
    %c0_49 = arith.constant 0 : index
    %80 = vector.load %arg10[%c9, %c0_48, %c0_49] : memref<22x1x256xf32, #tpu.memory_space<vmem>>, vector<1x1x256xf32>
    %81 = vector.shape_cast %80 : vector<1x1x256xf32> to vector<1x256xf32>
    %82 = vector.broadcast %81 : vector<1x256xf32> to vector<8x256xf32>
    %83 = arith.mulf %79, %82 : vector<8x256xf32>
    %c0_50 = arith.constant 0 : index
    %c0_51 = arith.constant 0 : index
    %84 = vector.load %arg14[%c0_50, %c0_51] : memref<72x256xf32, #tpu.memory_space<vmem>>, vector<8x256xf32>
    tpu.vector_store %arg14[%c0_50, %c0_51], %83 {strides = array<i32>} : memref<72x256xf32, #tpu.memory_space<vmem>>, vector<8x256xf32>,
    %c32_i32 = arith.constant 32 : i32
    %85 = tpu.dynamic_rotate %71 by %c32_i32 dim 1 : vector<8x256xf32>, i32 -> vector<8x256xf32>
    %c10 = arith.constant 10 : index
    %c0_52 = arith.constant 0 : index
    %c0_53 = arith.constant 0 : index
    %86 = vector.load %arg10[%c10, %c0_52, %c0_53] : memref<22x1x256xf32, #tpu.memory_space<vmem>>, vector<1x1x256xf32>
    %87 = vector.shape_cast %86 : vector<1x1x256xf32> to vector<1x256xf32>
    %88 = vector.broadcast %87 : vector<1x256xf32> to vector<8x256xf32>
    %89 = arith.mulf %85, %88 : vector<8x256xf32>
    %c8_54 = arith.constant 8 : index
    %c0_55 = arith.constant 0 : index
    %90 = vector.load %arg14[%c8_54, %c0_55] : memref<72x256xf32, #tpu.memory_space<vmem>>, vector<8x256xf32>
    tpu.vector_store %arg14[%c8_54, %c0_55], %89 {strides = array<i32>} : memref<72x256xf32, #tpu.memory_space<vmem>>, vector<8x256xf32>,
    %c30_i32 = arith.constant 30 : i32
    %91 = tpu.dynamic_rotate %71 by %c30_i32 dim 1 : vector<8x256xf32>, i32 -> vector<8x256xf32>
    %c11 = arith.constant 11 : index
    %c0_56 = arith.constant 0 : index
    %c0_57 = arith.constant 0 : index
    %92 = vector.load %arg10[%c11, %c0_56, %c0_57] : memref<22x1x256xf32, #tpu.memory_space<vmem>>, vector<1x1x256xf32>
    %93 = vector.shape_cast %92 : vector<1x1x256xf32> to vector<1x256xf32>
    %94 = vector.broadcast %93 : vector<1x256xf32> to vector<8x256xf32>
    %95 = arith.mulf %91, %94 : vector<8x256xf32>
    %c16_58 = arith.constant 16 : index
    %c0_59 = arith.constant 0 : index
    %96 = vector.load %arg14[%c16_58, %c0_59] : memref<72x256xf32, #tpu.memory_space<vmem>>, vector<8x256xf32>
    tpu.vector_store %arg14[%c16_58, %c0_59], %95 {strides = array<i32>} : memref<72x256xf32, #tpu.memory_space<vmem>>, vector<8x256xf32>,
    %c2_i32 = arith.constant 2 : i32
    %97 = tpu.dynamic_rotate %71 by %c2_i32 dim 1 : vector<8x256xf32>, i32 -> vector<8x256xf32>
    %c12 = arith.constant 12 : index
    %c0_60 = arith.constant 0 : index
    %c0_61 = arith.constant 0 : index
    %98 = vector.load %arg10[%c12, %c0_60, %c0_61] : memref<22x1x256xf32, #tpu.memory_space<vmem>>, vector<1x1x256xf32>
    %99 = vector.shape_cast %98 : vector<1x1x256xf32> to vector<1x256xf32>
    %100 = vector.broadcast %99 : vector<1x256xf32> to vector<8x256xf32>
    %101 = arith.mulf %97, %100 : vector<8x256xf32>
    %c24_62 = arith.constant 24 : index
    %c0_63 = arith.constant 0 : index
    %102 = vector.load %arg14[%c24_62, %c0_63] : memref<72x256xf32, #tpu.memory_space<vmem>>, vector<8x256xf32>
    tpu.vector_store %arg14[%c24_62, %c0_63], %101 {strides = array<i32>} : memref<72x256xf32, #tpu.memory_space<vmem>>, vector<8x256xf32>,
    %c32_64 = arith.constant 32 : index
    %c0_65 = arith.constant 0 : index
    %103 = vector.load %arg14[%c32_64, %c0_65] : memref<72x256xf32, #tpu.memory_space<vmem>>, vector<8x256xf32>
    tpu.vector_store %arg14[%c32_64, %c0_65], %71 {strides = array<i32>} : memref<72x256xf32, #tpu.memory_space<vmem>>, vector<8x256xf32>,
    %c254_i32 = arith.constant 254 : i32
    %104 = tpu.dynamic_rotate %71 by %c254_i32 dim 1 : vector<8x256xf32>, i32 -> vector<8x256xf32>
    %c14 = arith.constant 14 : index
    %c0_66 = arith.constant 0 : index
    %c0_67 = arith.constant 0 : index
    %105 = vector.load %arg10[%c14, %c0_66, %c0_67] : memref<22x1x256xf32, #tpu.memory_space<vmem>>, vector<1x1x256xf32>
    %106 = vector.shape_cast %105 : vector<1x1x256xf32> to vector<1x256xf32>
    %107 = vector.broadcast %106 : vector<1x256xf32> to vector<8x256xf32>
    %108 = arith.mulf %104, %107 : vector<8x256xf32>
    %c40_68 = arith.constant 40 : index
    %c0_69 = arith.constant 0 : index
    %109 = vector.load %arg14[%c40_68, %c0_69] : memref<72x256xf32, #tpu.memory_space<vmem>>, vector<8x256xf32>
    tpu.vector_store %arg14[%c40_68, %c0_69], %108 {strides = array<i32>} : memref<72x256xf32, #tpu.memory_space<vmem>>, vector<8x256xf32>,
    %c226_i32 = arith.constant 226 : i32
    %110 = tpu.dynamic_rotate %71 by %c226_i32 dim 1 : vector<8x256xf32>, i32 -> vector<8x256xf32>
    %c15 = arith.constant 15 : index
    %c0_70 = arith.constant 0 : index
    %c0_71 = arith.constant 0 : index
    %111 = vector.load %arg10[%c15, %c0_70, %c0_71] : memref<22x1x256xf32, #tpu.memory_space<vmem>>, vector<1x1x256xf32>
    %112 = vector.shape_cast %111 : vector<1x1x256xf32> to vector<1x256xf32>
    %113 = vector.broadcast %112 : vector<1x256xf32> to vector<8x256xf32>
    %114 = arith.mulf %110, %113 : vector<8x256xf32>
    %c48_72 = arith.constant 48 : index
    %c0_73 = arith.constant 0 : index
    %115 = vector.load %arg14[%c48_72, %c0_73] : memref<72x256xf32, #tpu.memory_space<vmem>>, vector<8x256xf32>
    tpu.vector_store %arg14[%c48_72, %c0_73], %114 {strides = array<i32>} : memref<72x256xf32, #tpu.memory_space<vmem>>, vector<8x256xf32>,
    %c224_i32 = arith.constant 224 : i32
    %116 = tpu.dynamic_rotate %71 by %c224_i32 dim 1 : vector<8x256xf32>, i32 -> vector<8x256xf32>
    %c16_74 = arith.constant 16 : index
    %c0_75 = arith.constant 0 : index
    %c0_76 = arith.constant 0 : index
    %117 = vector.load %arg10[%c16_74, %c0_75, %c0_76] : memref<22x1x256xf32, #tpu.memory_space<vmem>>, vector<1x1x256xf32>
    %118 = vector.shape_cast %117 : vector<1x1x256xf32> to vector<1x256xf32>
    %119 = vector.broadcast %118 : vector<1x256xf32> to vector<8x256xf32>
    %120 = arith.mulf %116, %119 : vector<8x256xf32>
    %c56_77 = arith.constant 56 : index
    %c0_78 = arith.constant 0 : index
    %121 = vector.load %arg14[%c56_77, %c0_78] : memref<72x256xf32, #tpu.memory_space<vmem>>, vector<8x256xf32>
    tpu.vector_store %arg14[%c56_77, %c0_78], %120 {strides = array<i32>} : memref<72x256xf32, #tpu.memory_space<vmem>>, vector<8x256xf32>,
    %c222_i32 = arith.constant 222 : i32
    %122 = tpu.dynamic_rotate %71 by %c222_i32 dim 1 : vector<8x256xf32>, i32 -> vector<8x256xf32>
    %c17 = arith.constant 17 : index
    %c0_79 = arith.constant 0 : index
    %c0_80 = arith.constant 0 : index
    %123 = vector.load %arg10[%c17, %c0_79, %c0_80] : memref<22x1x256xf32, #tpu.memory_space<vmem>>, vector<1x1x256xf32>
    %124 = vector.shape_cast %123 : vector<1x1x256xf32> to vector<1x256xf32>
    %125 = vector.broadcast %124 : vector<1x256xf32> to vector<8x256xf32>
    %126 = arith.mulf %122, %125 : vector<8x256xf32>
    %c64_81 = arith.constant 64 : index
    %c0_82 = arith.constant 0 : index
    %127 = vector.load %arg14[%c64_81, %c0_82] : memref<72x256xf32, #tpu.memory_space<vmem>>, vector<8x256xf32>
    tpu.vector_store %arg14[%c64_81, %c0_82], %126 {strides = array<i32>} : memref<72x256xf32, #tpu.memory_space<vmem>>, vector<8x256xf32>,
    %c0_83 = arith.constant 0 : index
    %c0_84 = arith.constant 0 : index
    %128 = vector.load %arg14[%c0_83, %c0_84] : memref<72x256xf32, #tpu.memory_space<vmem>>, vector<72x256xf32>
    %c0_85 = arith.constant 0 : index
    %c0_86 = arith.constant 0 : index
    %c0_87 = arith.constant 0 : index
    %129 = vector.load %arg7[%c0_85, %c0_86, %c0_87] : memref<3x8x1xf32, #tpu.memory_space<vmem>>, vector<1x8x1xf32>
    %130 = vector.shape_cast %129 : vector<1x8x1xf32> to vector<8x1xf32>
    %c0_88 = arith.constant 0 : index
    %c0_89 = arith.constant 0 : index
    %131 = vector.load %arg3[%c0_88, %c0_89] : memref<8x72xbf16, #tpu.memory_space<vmem>>, vector<8x72xbf16>
    %132 = arith.truncf %128 : vector<72x256xf32> to vector<72x256xbf16>
    %cst_90 = arith.constant dense<0.000000e+00> : vector<8x256xf32>
    %133 = tpu.matmul %131, %132, %cst_90 {dimension_numbers = #tpu.dot_dimension_numbers<[1], [0], [0], [1], [0, 0, 1, 1], [], []>} : vector<8x72xbf16>, vector<72x256xbf16>, vector<8x256xf32> -> vector<8x256xf32>
    %134 = vector.broadcast %130 : vector<8x1xf32> to vector<8x256xf32>
    %135 = arith.addf %133, %134 : vector<8x256xf32>
    %cst_91 = arith.constant 0.000000e+00 : f32
    %136 = vector.broadcast %cst_91 : f32 to vector<8x256xf32>
    %137 = arith.cmpf oge, %135, %136 : vector<8x256xf32>
    %cst_92 = arith.constant 0.00999999977 : f32
    %138 = vector.broadcast %cst_92 : f32 to vector<8x256xf32>
    %139 = arith.mulf %138, %135 : vector<8x256xf32>
    %140 = arith.select %137, %135, %139 : vector<8x256xi1>, vector<8x256xf32>
    %c1_93 = arith.constant 1 : index
    %c0_94 = arith.constant 0 : index
    %c0_95 = arith.constant 0 : index
    %141 = vector.load %arg8[%c1_93, %c0_94, %c0_95] : memref<4x8x1xf32, #tpu.memory_space<vmem>>, vector<1x8x1xf32>
    %142 = vector.shape_cast %141 : vector<1x8x1xf32> to vector<8x1xf32>
    %143 = vector.broadcast %142 : vector<8x1xf32> to vector<8x256xf32>
    %144 = arith.mulf %140, %143 : vector<8x256xf32>
    %c1_96 = arith.constant 1 : index
    %c0_97 = arith.constant 0 : index
    %c0_98 = arith.constant 0 : index
    %145 = vector.load %arg9[%c1_96, %c0_97, %c0_98] : memref<4x8x1xf32, #tpu.memory_space<vmem>>, vector<1x8x1xf32>
    %146 = vector.shape_cast %145 : vector<1x8x1xf32> to vector<8x1xf32>
    %147 = vector.broadcast %146 : vector<8x1xf32> to vector<8x256xf32>
    %148 = arith.addf %144, %147 : vector<8x256xf32>
    %c8_99 = arith.constant 8 : index
    %c0_100 = arith.constant 0 : index
    %149 = vector.load %arg15[%c8_99, %c0_100] : memref<24x256xf32, #tpu.memory_space<vmem>>, vector<8x256xf32>
    tpu.vector_store %arg15[%c8_99, %c0_100], %148 {strides = array<i32>} : memref<24x256xf32, #tpu.memory_space<vmem>>, vector<8x256xf32>,
    %c17_i32_101 = arith.constant 17 : i32
    %150 = tpu.dynamic_rotate %148 by %c17_i32_101 dim 1 : vector<8x256xf32>, i32 -> vector<8x256xf32>
    %c18 = arith.constant 18 : index
    %c0_102 = arith.constant 0 : index
    %c0_103 = arith.constant 0 : index
    %151 = vector.load %arg10[%c18, %c0_102, %c0_103] : memref<22x1x256xf32, #tpu.memory_space<vmem>>, vector<1x1x256xf32>
    %152 = vector.shape_cast %151 : vector<1x1x256xf32> to vector<1x256xf32>
    %153 = vector.broadcast %152 : vector<1x256xf32> to vector<8x256xf32>
    %154 = arith.mulf %150, %153 : vector<8x256xf32>
    %c0_104 = arith.constant 0 : index
    %c0_105 = arith.constant 0 : index
    %155 = vector.load %arg14[%c0_104, %c0_105] : memref<72x256xf32, #tpu.memory_space<vmem>>, vector<8x256xf32>
    tpu.vector_store %arg14[%c0_104, %c0_105], %154 {strides = array<i32>} : memref<72x256xf32, #tpu.memory_space<vmem>>, vector<8x256xf32>,
    %c15_i32_106 = arith.constant 15 : i32
    %156 = tpu.dynamic_rotate %148 by %c15_i32_106 dim 1 : vector<8x256xf32>, i32 -> vector<8x256xf32>
    %c19 = arith.constant 19 : index
    %c0_107 = arith.constant 0 : index
    %c0_108 = arith.constant 0 : index
    %157 = vector.load %arg10[%c19, %c0_107, %c0_108] : memref<22x1x256xf32, #tpu.memory_space<vmem>>, vector<1x1x256xf32>
    %158 = vector.shape_cast %157 : vector<1x1x256xf32> to vector<1x256xf32>
    %159 = vector.broadcast %158 : vector<1x256xf32> to vector<8x256xf32>
    %160 = arith.mulf %156, %159 : vector<8x256xf32>
    %c8_109 = arith.constant 8 : index
    %c0_110 = arith.constant 0 : index
    %161 = vector.load %arg14[%c8_109, %c0_110] : memref<72x256xf32, #tpu.memory_space<vmem>>, vector<8x256xf32>
    tpu.vector_store %arg14[%c8_109, %c0_110], %160 {strides = array<i32>} : memref<72x256xf32, #tpu.memory_space<vmem>>, vector<8x256xf32>,
    %c241_i32_111 = arith.constant 241 : i32
    %162 = tpu.dynamic_rotate %148 by %c241_i32_111 dim 1 : vector<8x256xf32>, i32 -> vector<8x256xf32>
    %c20 = arith.constant 20 : index
    %c0_112 = arith.constant 0 : index
    %c0_113 = arith.constant 0 : index
    %163 = vector.load %arg10[%c20, %c0_112, %c0_113] : memref<22x1x256xf32, #tpu.memory_space<vmem>>, vector<1x1x256xf32>
    %164 = vector.shape_cast %163 : vector<1x1x256xf32> to vector<1x256xf32>
    %165 = vector.broadcast %164 : vector<1x256xf32> to vector<8x256xf32>
    %166 = arith.mulf %162, %165 : vector<8x256xf32>
    %c16_114 = arith.constant 16 : index
    %c0_115 = arith.constant 0 : index
    %167 = vector.load %arg14[%c16_114, %c0_115] : memref<72x256xf32, #tpu.memory_space<vmem>>, vector<8x256xf32>
    tpu.vector_store %arg14[%c16_114, %c0_115], %166 {strides = array<i32>} : memref<72x256xf32, #tpu.memory_space<vmem>>, vector<8x256xf32>,
    %c239_i32_116 = arith.constant 239 : i32
    %168 = tpu.dynamic_rotate %148 by %c239_i32_116 dim 1 : vector<8x256xf32>, i32 -> vector<8x256xf32>
    %c21 = arith.constant 21 : index
    %c0_117 = arith.constant 0 : index
    %c0_118 = arith.constant 0 : index
    %169 = vector.load %arg10[%c21, %c0_117, %c0_118] : memref<22x1x256xf32, #tpu.memory_space<vmem>>, vector<1x1x256xf32>
    %170 = vector.shape_cast %169 : vector<1x1x256xf32> to vector<1x256xf32>
    %171 = vector.broadcast %170 : vector<1x256xf32> to vector<8x256xf32>
    %172 = arith.mulf %168, %171 : vector<8x256xf32>
    %c24_119 = arith.constant 24 : index
    %c0_120 = arith.constant 0 : index
    %173 = vector.load %arg14[%c24_119, %c0_120] : memref<72x256xf32, #tpu.memory_space<vmem>>, vector<8x256xf32>
    tpu.vector_store %arg14[%c24_119, %c0_120], %172 {strides = array<i32>} : memref<72x256xf32, #tpu.memory_space<vmem>>, vector<8x256xf32>,
    %c0_121 = arith.constant 0 : index
    %c0_122 = arith.constant 0 : index
    %174 = vector.load %arg14[%c0_121, %c0_122] : memref<72x256xf32, #tpu.memory_space<vmem>>, vector<32x256xf32>
    %c1_123 = arith.constant 1 : index
    %c0_124 = arith.constant 0 : index
    %c0_125 = arith.constant 0 : index
    %175 = vector.load %arg7[%c1_123, %c0_124, %c0_125] : memref<3x8x1xf32, #tpu.memory_space<vmem>>, vector<1x8x1xf32>
    %176 = vector.shape_cast %175 : vector<1x8x1xf32> to vector<8x1xf32>
    %c0_126 = arith.constant 0 : index
    %c0_127 = arith.constant 0 : index
    %177 = vector.load %arg4[%c0_126, %c0_127] : memref<8x32xbf16, #tpu.memory_space<vmem>>, vector<8x32xbf16>
    %178 = arith.truncf %174 : vector<32x256xf32> to vector<32x256xbf16>
    %cst_128 = arith.constant dense<0.000000e+00> : vector<8x256xf32>
    %179 = tpu.matmul %177, %178, %cst_128 {dimension_numbers = #tpu.dot_dimension_numbers<[1], [0], [0], [1], [0, 0, 1, 1], [], []>} : vector<8x32xbf16>, vector<32x256xbf16>, vector<8x256xf32> -> vector<8x256xf32>
    %180 = vector.broadcast %176 : vector<8x1xf32> to vector<8x256xf32>
    %181 = arith.addf %179, %180 : vector<8x256xf32>
    %cst_129 = arith.constant 0.000000e+00 : f32
    %182 = vector.broadcast %cst_129 : f32 to vector<8x256xf32>
    %183 = arith.cmpf oge, %181, %182 : vector<8x256xf32>
    %cst_130 = arith.constant 0.00999999977 : f32
    %184 = vector.broadcast %cst_130 : f32 to vector<8x256xf32>
    %185 = arith.mulf %184, %181 : vector<8x256xf32>
    %186 = arith.select %183, %181, %185 : vector<8x256xi1>, vector<8x256xf32>
    %c2_131 = arith.constant 2 : index
    %c0_132 = arith.constant 0 : index
    %c0_133 = arith.constant 0 : index
    %187 = vector.load %arg8[%c2_131, %c0_132, %c0_133] : memref<4x8x1xf32, #tpu.memory_space<vmem>>, vector<1x8x1xf32>
    %188 = vector.shape_cast %187 : vector<1x8x1xf32> to vector<8x1xf32>
    %189 = vector.broadcast %188 : vector<8x1xf32> to vector<8x256xf32>
    %190 = arith.mulf %186, %189 : vector<8x256xf32>
    %c2_134 = arith.constant 2 : index
    %c0_135 = arith.constant 0 : index
    %c0_136 = arith.constant 0 : index
    %191 = vector.load %arg9[%c2_134, %c0_135, %c0_136] : memref<4x8x1xf32, #tpu.memory_space<vmem>>, vector<1x8x1xf32>
    %192 = vector.shape_cast %191 : vector<1x8x1xf32> to vector<8x1xf32>
    %193 = vector.broadcast %192 : vector<8x1xf32> to vector<8x256xf32>
    %194 = arith.addf %190, %193 : vector<8x256xf32>
    %c16_137 = arith.constant 16 : index
    %c0_138 = arith.constant 0 : index
    %195 = vector.load %arg15[%c16_137, %c0_138] : memref<24x256xf32, #tpu.memory_space<vmem>>, vector<8x256xf32>
    tpu.vector_store %arg15[%c16_137, %c0_138], %194 {strides = array<i32>} : memref<24x256xf32, #tpu.memory_space<vmem>>, vector<8x256xf32>,
    %c0_139 = arith.constant 0 : index
    %c0_140 = arith.constant 0 : index
    %196 = vector.load %arg15[%c0_139, %c0_140] : memref<24x256xf32, #tpu.memory_space<vmem>>, vector<24x256xf32>
    %c2_141 = arith.constant 2 : index
    %c0_142 = arith.constant 0 : index
    %c0_143 = arith.constant 0 : index
    %197 = vector.load %arg7[%c2_141, %c0_142, %c0_143] : memref<3x8x1xf32, #tpu.memory_space<vmem>>, vector<1x8x1xf32>
    %198 = vector.shape_cast %197 : vector<1x8x1xf32> to vector<8x1xf32>
    %c0_144 = arith.constant 0 : index
    %c0_145 = arith.constant 0 : index
    %199 = vector.load %arg5[%c0_144, %c0_145] : memref<8x24xbf16, #tpu.memory_space<vmem>>, vector<8x24xbf16>
    %200 = arith.truncf %196 : vector<24x256xf32> to vector<24x256xbf16>
    %cst_146 = arith.constant dense<0.000000e+00> : vector<8x256xf32>
    %201 = tpu.matmul %199, %200, %cst_146 {dimension_numbers = #tpu.dot_dimension_numbers<[1], [0], [0], [1], [0, 0, 1, 1], [], []>} : vector<8x24xbf16>, vector<24x256xbf16>, vector<8x256xf32> -> vector<8x256xf32>
    %202 = vector.broadcast %198 : vector<8x1xf32> to vector<8x256xf32>
    %203 = arith.addf %201, %202 : vector<8x256xf32>
    %cst_147 = arith.constant 0.000000e+00 : f32
    %204 = vector.broadcast %cst_147 : f32 to vector<8x256xf32>
    %205 = arith.cmpf oge, %203, %204 : vector<8x256xf32>
    %cst_148 = arith.constant 0.00999999977 : f32
    %206 = vector.broadcast %cst_148 : f32 to vector<8x256xf32>
    %207 = arith.mulf %206, %203 : vector<8x256xf32>
    %208 = arith.select %205, %203, %207 : vector<8x256xi1>, vector<8x256xf32>
    %c3_149 = arith.constant 3 : index
    %c0_150 = arith.constant 0 : index
    %c0_151 = arith.constant 0 : index
    %209 = vector.load %arg8[%c3_149, %c0_150, %c0_151] : memref<4x8x1xf32, #tpu.memory_space<vmem>>, vector<1x8x1xf32>
    %210 = vector.shape_cast %209 : vector<1x8x1xf32> to vector<8x1xf32>
    %211 = vector.broadcast %210 : vector<8x1xf32> to vector<8x256xf32>
    %212 = arith.mulf %208, %211 : vector<8x256xf32>
    %c3_152 = arith.constant 3 : index
    %c0_153 = arith.constant 0 : index
    %c0_154 = arith.constant 0 : index
    %213 = vector.load %arg9[%c3_152, %c0_153, %c0_154] : memref<4x8x1xf32, #tpu.memory_space<vmem>>, vector<1x8x1xf32>
    %214 = vector.shape_cast %213 : vector<1x8x1xf32> to vector<8x1xf32>
    %215 = vector.broadcast %214 : vector<8x1xf32> to vector<8x256xf32>
    %216 = arith.addf %212, %215 : vector<8x256xf32>
    %217 = arith.addf %77, %216 : vector<8x256xf32>
    %c0_155 = arith.constant 0 : index
    %c0_156 = arith.constant 0 : index
    %c0_157 = arith.constant 0 : index
    %218 = vector.load %arg13[%c0_155, %c0_156, %c0_157] : memref<1x8x256xf32, #tpu.memory_space<vmem>>, vector<1x8x256xf32>
    %219 = vector.shape_cast %218 : vector<1x8x256xf32> to vector<8x256xf32>
    %220 = vector.shape_cast %217 : vector<8x256xf32> to vector<1x8x256xf32>
    tpu.vector_store %arg13[%c0_155, %c0_156, %c0_157], %220 {strides = array<i32>} : memref<1x8x256xf32, #tpu.memory_space<vmem>>, vector<1x8x256xf32>,
    %221 = arith.truncf %217 : vector<8x256xf32> to vector<8x256xbf16>
    %c0_158 = arith.constant 0 : index
    %c0_159 = arith.constant 0 : index
    %222 = vector.load %arg11[%c0_158, %c0_159] : memref<256x128xbf16, #tpu.memory_space<vmem>>, vector<256x128xbf16>
    %cst_160 = arith.constant dense<0.000000e+00> : vector<8x128xf32>
    %223 = tpu.matmul %221, %222, %cst_160 {dimension_numbers = #tpu.dot_dimension_numbers<[1], [0], [0], [1], [0, 0, 1, 1], [], []>} : vector<8x256xbf16>, vector<256x128xbf16>, vector<8x128xf32> -> vector<8x128xf32>
    %cst_161 = arith.constant 2.500000e-01 : f32
    %224 = vector.broadcast %cst_161 : f32 to vector<8x128xf32>
    %225 = arith.mulf %223, %224 : vector<8x128xf32>
    %c0_162 = arith.constant 0 : index
    %c0_163 = arith.constant 0 : index
    %c0_164 = arith.constant 0 : index
    %226 = vector.load %arg12[%c0_162, %c0_163, %c0_164] : memref<1x8x128xf32, #tpu.memory_space<vmem>>, vector<1x8x128xf32>
    %227 = vector.shape_cast %226 : vector<1x8x128xf32> to vector<8x128xf32>
    %228 = vector.shape_cast %225 : vector<8x128xf32> to vector<1x8x128xf32>
    tpu.vector_store %arg12[%c0_162, %c0_163, %c0_164], %228 {strides = array<i32>} : memref<1x8x128xf32, #tpu.memory_space<vmem>>, vector<1x8x128xf32>,
    return
  }
  func.func @transform_0(%arg0: i32) -> (i32, i32, i32) {
    %c0_i32 = arith.constant 0 : i32
    %c0_i32_0 = arith.constant 0 : i32
    %c0_i32_1 = arith.constant 0 : i32
    return %arg0, %c0_i32, %c0_i32_0 : i32, i32, i32
  }
  func.func @transform_1(%arg0: i32) -> (i32, i32) {
    %c0_i32 = arith.constant 0 : i32
    %c0_i32_0 = arith.constant 0 : i32
    %c0_i32_1 = arith.constant 0 : i32
    return %c0_i32, %c0_i32_0 : i32, i32
  }
  func.func @transform_2(%arg0: i32) -> (i32, i32) {
    %c0_i32 = arith.constant 0 : i32
    %c0_i32_0 = arith.constant 0 : i32
    %c0_i32_1 = arith.constant 0 : i32
    return %c0_i32, %c0_i32_0 : i32, i32
  }
  func.func @transform_3(%arg0: i32) -> (i32, i32) {
    %c0_i32 = arith.constant 0 : i32
    %c0_i32_0 = arith.constant 0 : i32
    %c0_i32_1 = arith.constant 0 : i32
    return %c0_i32, %c0_i32_0 : i32, i32
  }
  func.func @transform_4(%arg0: i32) -> (i32, i32) {
    %c0_i32 = arith.constant 0 : i32
    %c0_i32_0 = arith.constant 0 : i32
    %c0_i32_1 = arith.constant 0 : i32
    return %c0_i32, %c0_i32_0 : i32, i32
  }
  func.func @transform_5(%arg0: i32) -> (i32, i32) {
    %c0_i32 = arith.constant 0 : i32
    %c0_i32_0 = arith.constant 0 : i32
    %c0_i32_1 = arith.constant 0 : i32
    return %c0_i32, %c0_i32_0 : i32, i32
  }
  func.func @transform_6(%arg0: i32) -> (i32, i32, i32) {
    %c0_i32 = arith.constant 0 : i32
    %c0_i32_0 = arith.constant 0 : i32
    %c0_i32_1 = arith.constant 0 : i32
    %c0_i32_2 = arith.constant 0 : i32
    return %c0_i32, %c0_i32_0, %c0_i32_1 : i32, i32, i32
  }
  func.func @transform_7(%arg0: i32) -> (i32, i32, i32) {
    %c0_i32 = arith.constant 0 : i32
    %c0_i32_0 = arith.constant 0 : i32
    %c0_i32_1 = arith.constant 0 : i32
    %c0_i32_2 = arith.constant 0 : i32
    return %c0_i32, %c0_i32_0, %c0_i32_1 : i32, i32, i32
  }
  func.func @transform_8(%arg0: i32) -> (i32, i32, i32) {
    %c0_i32 = arith.constant 0 : i32
    %c0_i32_0 = arith.constant 0 : i32
    %c0_i32_1 = arith.constant 0 : i32
    %c0_i32_2 = arith.constant 0 : i32
    return %c0_i32, %c0_i32_0, %c0_i32_1 : i32, i32, i32
  }
  func.func @transform_9(%arg0: i32) -> (i32, i32, i32) {
    %c0_i32 = arith.constant 0 : i32
    %c0_i32_0 = arith.constant 0 : i32
    %c0_i32_1 = arith.constant 0 : i32
    %c0_i32_2 = arith.constant 0 : i32
    return %c0_i32, %c0_i32_0, %c0_i32_1 : i32, i32, i32
  }
  func.func @transform_10(%arg0: i32) -> (i32, i32) {
    %c0_i32 = arith.constant 0 : i32
    %c0_i32_0 = arith.constant 0 : i32
    %c0_i32_1 = arith.constant 0 : i32
    return %c0_i32, %c0_i32_0 : i32, i32
  }
  func.func @transform_11(%arg0: i32) -> (i32, i32, i32) {
    %c0_i32 = arith.constant 0 : i32
    %c0_i32_0 = arith.constant 0 : i32
    %c0_i32_1 = arith.constant 0 : i32
    return %arg0, %c0_i32, %c0_i32_0 : i32, i32, i32
  }
  func.func @transform_12(%arg0: i32) -> (i32, i32, i32) {
    %c0_i32 = arith.constant 0 : i32
    %c0_i32_0 = arith.constant 0 : i32
    %c0_i32_1 = arith.constant 0 : i32
    return %arg0, %c0_i32, %c0_i32_0 : i32, i32, i32
  }
}

</mosaic_0001>

<bundles_post_ra>
// kernel: tpu_custom_call.1
= control target key start
LH: loop header
LB: loop body
LE: loop exit
PB: predicated region body
PF: predicated region fallthrough
CT: control target
= control target key end

     0   :  { %s2612_s0 = inlined_call_operand.hbm [shape: f32[2,8,256], index: 0, kind: input, shape index: {}]   ;;  %s2613_s1 = inlined_call_operand.vmem [shape: bf16[16,72], index: 1, kind: input, shape index: {}]   ;;  %s2614_s2 = inlined_call_operand.vmem [shape: bf16[8,72], index: 2, kind: input, shape index: {}]   ;;  %s2615_s3 = inlined_call_operand.vmem [shape: bf16[8,32], index: 3, kind: input, shape index: {}]   ;;  %s2616_s4 = inlined_call_operand.vmem [shape: bf16[8,24], index: 4, kind: input, shape index: {}]   ;;  %s2617_s5 = inlined_call_operand.vmem [shape: f32[16,1], index: 5, kind: input, shape index: {}]   ;;  %s2618_s6 = inlined_call_operand.vmem [shape: f32[3,8,1], index: 6, kind: input, shape index: {}]   ;;  %s2619_s7 = inlined_call_operand.vmem [shape: f32[4,8,1], index: 7, kind: input, shape index: {}]   ;;  %s2620_s8 = inlined_call_operand.vmem [shape: f32[4,8,1], index: 8, kind: input, shape index: {}]   ;;  %s2621_s9 = inlined_call_operand.hbm [shape: f32[22,1,256], index: 9, kind: input, shape index: {}]   ;;  %s2622_s10 = inlined_call_operand.vmem [shape: bf16[256,128], index: 10, kind: input, shape index: {}]   ;;  %s2623_s11 = inlined_call_operand.hbm [shape: f32[2,8,128], index: 11, kind: output, shape index: {0}]   ;;  %s2624_s12 = inlined_call_operand.hbm [shape: f32[2,8,256], index: 12, kind: output, shape index: {1}]  }
   0x1   :  { %2634 = sst [smem:[#allocation19_spill]] %s2623_s11 }
   0x2   :  { %2635 = sst [smem:[#allocation20_spill]] %s2624_s12 }
   0x3   :  { %18 = vsyncpa [#allocation5], 0 }
   0x4   :  { %20 = vsyncpa [#allocation5 + $0x1], 0 }
   0x5   :  { %21 = vsyncpa [#allocation8], 0 }
   0x6   :  { %22 = vsyncpa [#allocation6], 0 }
   0x7   :  { %24 = vsyncpa [#allocation6 + $0x1], 0 }
   0x8   :  { %25 = vsyncpa [#allocation11], 0 }
   0x9   :  { %27 = vsyncpa [#allocation11 + $0x1], 0  ;;  %s2112_s21 = smov 0   ;;  %s2114_s22 = smov 0  }
   0xa   :  { %s2116_s23 = smov 0   ;;  %s2118_s24 = smov 0  }
   0xb LB: > { %2636 = sst [smem:[#allocation16_spill]] %s2010_s21  ;;  %s2133_s25 = sadd.s32 4294967295, %s2022_s24   ;;  %s2022_s24 = sphi %s2118_s24, %s2656_s24   ;;  %s2018_s23 = sphi %s2116_s23, %s2659_s23   ;;  %s2014_s22 = sphi %s2114_s22, %s2658_s22   ;;  %s2010_s21 = sphi %s2112_s21, %s2657_s21  }
   0xc   : > { %s1687_s26 = sadd.s32 4294967294, %s2022_s24   ;;  %p53_p0 = scmp.ne.s32.totalorder %s2014_s22, %s2010_s21 }
   0xd   : > { %p2629_p1 = scmp.eq.s32.totalorder %s2133_s25, 0  ;;  %p293_p3 = scmp.eq.s32.totalorder %s1687_s26, 1 }
   0xe   : > { %p1688_p5 = scmp.ge.s32.totalorder %s2022_s24, 1  ;;  %p326_p7 = scmp.lt.s32.totalorder %s2022_s24, 3 }
   0xf   : > { %p2142_p4 = por %p2629_p1, %p53_p0  ;;  %p2147_p6 = por %p293_p3, %p53_p0 }
  0x10   : > { %p2152_p8 = pnand %p1688_p5, %p326_p7  ;;  %s2024_s30 = smov [#allocation7]  }
  0x11   : > { %s2637_s27 = scalar_select %p2142_p4, 1, 0 }
  0x12   : > { %s2638_s28 = scalar_select %p2147_p6, 1, 0 }
  0x13   : > { %s2640_s29 = scalar_select %p2152_p8, 1, 0 }
  0x14   : > { %2639 = sst [smem:[#allocation17_spill]] %s2638_s28  ;;  %s362_s13 = sshll.u32 %s2024_s30, 4  ;;  %s2156_s13 = int_to_ptr.vmem [resolvable:$true] %s362_s13 }
  0x15   : > { %p1772_p9 = pneg %p2152_p8  ;;  %s2168_s15 = sadd.s32 1, %s2022_s24  }
  0x16   : > { %2642 = sst [smem:[#allocation18_spill]] %s2168_s15  ;;  %s40_s16 = sadd.s32 1, %s2018_s23 }
  0x17   : > { %p2163_p11 = pnand %p1772_p9, %p2629_p1  ;;  %s37_s17 = ssub.s32 %s2022_s24, %s2168_s15 }
  0x18   : > { %s1862_s20 = scalar_lea.hbm %s2621_s9, 704 }
  0x19   : > { %p1863_p12 = scmp.ne.s32.totalorder %s2621_s9, %s1862_s20  ;;  %p1864_p13 = pneg %p2163_p11 }
  0x1a   : > { %p1869_p5 = scmp.lt.u32.totalorder %s1862_s20, %s2621_s9 }
  0x1b   : > { %p1865_p0 = pnand %p1864_p13, %p1863_p12 }
  0x1d   : > { %p1866_p3 = pneg %p1865_p0 }
  0x1f   : > { %p1871_p7 = pnand %p1869_p5, %p1866_p3 }
  0x21   : > { %1874 = shalt.err (!%p1871_p7)
}
  0x22   : > { %s1875_s15 = scalar_lea.vmem %s2156_s13, 704  ;;  %p1883_p2 = scmp.lt.s32.totalorder %s2156_s13, %s2156_s13 }
  0x23   : > { %p1876_p9 = scmp.ne.s32.totalorder %s2156_s13, %s1875_s15  ;;  %p1884_p6 = scmp.lt.s32.totalorder %s1875_s15, %s1875_s15 }
  0x25   : > { %p1878_p10 = pnand %p1876_p9, %p1864_p13  ;;  %p1885_p4 = por %p1884_p6, %p1883_p2 }
  0x27   : > { %p1879_p1 = pneg %p1878_p10 }
  0x29   : > { %p1886_p8 = pnand %p1885_p4, %p1879_p1 }
  0x2b   : > { %1889 = shalt.err (!%p1886_p8)
}
  0x2c   : > { %s2025_s18 = smov 32   ;;  %s2026_s21 = smov 2  }
  0x2d   : > { %1775 = dma.hbm_to_vmem [thread:$0]  (!%p2163_p11), %s2621_s9, 704, %s2156_s13, [#allocation8], %s2025_s18, %s2025_s18, %s2026_s21  }
  0x2e   : > { %p38_p2 = scmp.eq.s32.totalorder %s37_s17, 0  ;;  %p47_p1 = scmp.ne.s32.totalorder %s2018_s23, %s2014_s22 }
  0x2f   : > { %p48_p4 = scmp.eq.s32.totalorder %s2022_s24, 0  ;;  %p1788_p6 = scmp.lt.s32.totalorder %s2022_s24, 2 }
  0x30   : > { %s2199_s15 = scalar_select %p38_p2, %s2018_s23, %s40_s16  }
  0x31   : > { %p49_p8 = por %p48_p4, %p47_p1  ;;  %p2643_p10 = scmp.eq.s32.totalorder %s2133_s25, 1 }
  0x32   : > { %s379_s26 = sand.u32 1, %s2018_s23   ;;  %s1738_s30 = sshll.u32 %s2022_s24, 8 }
  0x33   : > { %p2203_p12 = por %p2643_p10, %p47_p1  ;;  %s1691_s11 = sshll.u32 %s379_s26, 4 }
  0x34   : > { %s2212_s28 = scalar_lea.hbm %s2612_s0, %s1738_s30  ;;  %s383_s13 = scalar_lea.vmem [#allocation4], %s1691_s11 }
  0x35   : > { %s391_s16 = sshll.u32 %s383_s13, 4  ;;  %p2214_p11 = pnand %p1788_p6, %p49_p8  ;;  %s2218_s16 = int_to_ptr.vmem [resolvable:$true] %s391_s16 }
  0x36   : > { %s380_s18 = scalar_lea.sflag [#allocation5], %s379_s26  ;;  %s1890_s21 = scalar_lea.hbm %s2212_s28, 256 }
  0x37   : > { %p1891_p13 = scmp.ne.s32.totalorder %s2212_s28, %s1890_s21  ;;  %p1892_p0 = pneg %p2214_p11 }
  0x38   : > { %s1895_s19 = scalar_lea.hbm %s2612_s0, 512  ;;  %p1896_p7 = scmp.lt.u32.totalorder %s2212_s28, %s2612_s0 }
  0x39   : > { %p1893_p3 = pnand %p1892_p0, %p1891_p13  ;;  %p1897_p9 = scmp.lt.u32.totalorder %s1895_s19, %s1890_s21 }
  0x3a   : > { %p1899_p1 = scmp.lt.u32.totalorder %s1890_s21, %s2212_s28 }
  0x3b   : > { %p1894_p5 = pneg %p1893_p3  ;;  %p1898_p2 = por %p1897_p9, %p1896_p7 }
  0x3d   : > { %p1900_p4 = por %p1899_p1, %p1898_p2 }
  0x3f   : > { %p1901_p6 = pnand %p1900_p4, %p1894_p5 }
  0x41   : > { %1904 = shalt.err (!%p1901_p6)
}
  0x42   : > { %s1905_s26 = scalar_lea.vmem %s2218_s16, 256  ;;  %s2027_s13 = smov [#allocation4]  }
  0x43   : > { %p1906_p8 = scmp.ne.s32.totalorder %s2218_s16, %s1905_s26  ;;  %s1910_s12 = sshll.u32 %s2027_s13, 4  ;;  %s1911_s12 = int_to_ptr.vmem [resolvable:$false] %s1910_s12 }
  0x44   : > { %s1912_s11 = scalar_lea.vmem %s1911_s12, 512  ;;  %p1913_p3 = scmp.lt.s32.totalorder %s2218_s16, %s1911_s12 }
  0x45   : > { %p1908_p10 = pnand %p1906_p8, %p1892_p0  ;;  %p1914_p7 = scmp.lt.s32.totalorder %s1912_s11, %s1905_s26 }
  0x47   : > { %p1909_p13 = pneg %p1908_p10  ;;  %p1915_p9 = por %p1914_p7, %p1913_p3 }
  0x49   : > { %p1916_p2 = pnand %p1915_p9, %p1909_p13 }
  0x4b   : > { %1919 = shalt.err (!%p1916_p2)
}
  0x4c   : > { %1779 = dma.hbm_to_vmem [thread:$0]  (!%p2214_p11), %s2212_s28, 256, %s2218_s16, %s380_s18  }
  0x4d   : > { %p2646_p5 = scmp.ne.s32.totalorder %s2640_s29, 0 }
  0x4e   : > { %s2248_s21 = sand.u32 (!%p2646_p5), 1, %s2014_s22   ;;  %p2647_p0 = scmp.ne.s32.totalorder (!%p2646_p5), %s2637_s27, 0 }
  0x4f   : > { %400 = sbr.rel (%p2646_p5) target bundleno = 1661 (0x67d), region = 64  ;;  %s1695_s19 = sshll.u32 (!%p2646_p5), %s2248_s21, 4 }
  0x50   : > { %s403_s30 = scalar_lea.sflag (!%p2646_p5), [#allocation5], %s2248_s21  ;;  %s406_s14 = scalar_lea.vmem (!%p2646_p5), [#allocation4], %s1695_s19 }
  0x56   : > { %1993 = dma.done.wait (%p2647_p0), %s403_s30, 256  }
  0x57   : > { %1995 = vsyncadd (%p2647_p0), %s403_s30, 4294967040  ;;  %p2648_p11 = scmp.eq.s32.totalorder %s2133_s25, 0 }
  0x59   : > { %1997 = dma.done.wait (%p2648_p11), [#allocation8], 704   ;;  %p2649_p1 = pmov %p2648_p11 }
  0x5a   : > { %v2262_v0 = vld [vmem:[%s406_s14] sm:$0xff]  ;;  %s2028_s29 = smov 16   ;;  %s2029_s28 = smov 17   ;;  %v2267_v1 = vld [vmem:[%s406_s14 + $0x8] sm:$0xff]  ;;  %v2034_v2 = vmov 0   ;;  %v463_v6 = vlaneseq  ;;  %vm705_vm8 = vcmask 1043456  }
  0x5b   : > { %1999 = vsyncadd (%p2649_p1), [#allocation8], 4294966592  ;;  %484 = vrot.lane.b32.xlu1 %v2262_v0, %s2028_s29  ;;  %459 = vrot.lane.b32.xlu0 %v2262_v0, %s2029_s28  ;;  %s2030_s27 = smov 15   ;;  %s2031_s16 = smov 1   ;;  %v761_v3 = vld [vmem:[%s2619_s7] sm:$0xff]  ;;  %vm701_vm9 = vcmask 588800  }
  0x5c   : > { %s2032_s17 = smov 127   ;;  %s2033_s18 = smov 113   ;;  %744 = vmatprep.mubr.bf16.mxu1 %v2034_v2  ;;  %1844 = vset.pattern.permute.xlu1 %v2034_v2  ;;  %v672_v4 = vld [vmem:[%s2617_s5] sm:$0xff]  ;;  %v471_v7 = vshrl.u32 %v463_v6, 7  ;;  %v2303_v8 = vand.u32 127, %v463_v6 }
  0x5d   : > { %1843 = vset.pattern.permute.xlu0 %v2034_v2  ;;  %1238 = vmatprep.mubr.bf16.mxu0 %v2034_v2  ;;  %s2035_s26 = smov 112   ;;  %s2036_s13 = smov 111   ;;  %v769_v5 = vld [vmem:[%s2620_s8] sm:$0xff]  ;;  %v566_v39 = vld [vmem:[#allocation7 + $0xa] sm:$0x3] }
  0x5e   : > { %v2305_v9 = vsub.s32 0, %v471_v7  ;;  %v2307_v10 = vsub.s32 1, %v471_v7  ;;  %v492_v11 = vld [vmem:[#allocation7 + $0x2] sm:$0x3]  ;;  %v468_v12 = vld [vmem:[#allocation7] sm:$0x3] }
  0x5f   : > { %486 = vrot.lane.b32.xlu1 %v2267_v1, %s2028_s29  ;;  %461 = vrot.lane.b32.xlu0 %v2267_v1, %s2029_s28  ;;  %vm488_vm0 = vcmp.lt.s32.totalorder %v2303_v8, 16  ;;  %vm465_vm1 = vcmp.lt.s32.totalorder %v2303_v8, 17  ;;  %v516_v29 = vld [vmem:[#allocation7 + $0x4] sm:$0x3]  ;;  %v540_v30 = vld [vmem:[#allocation7 + $0x6] sm:$0x3] }
  0x60   : > { %v497_v15 = vrot.slane %v492_v11, %v2305_v9  ;;  %v473_v16 = vrot.slane %v468_v12, %v2305_v9  ;;  %v477_v17 = vrot.slane %v468_v12, %v2307_v10  ;;  %v501_v18 = vrot.slane %v492_v11, %v2307_v10  ;;  %v590_v60 = vld [vmem:[#allocation7 + $0xc] sm:$0x3]  ;;  %v614_v61 = vld [vmem:[#allocation7 + $0xe] sm:$0x3]  ;;  %v638_v12 = vld [vmem:[#allocation7 + $0x10] sm:$0x3] }
  0x61   : > { %vm512_vm2 = vcmp.lt.s32.totalorder %v2303_v8, 15  ;;  %vm536_vm3 = vcmp.lt.s32.totalorder %v2303_v8, 1  ;;  %v521_v35 = vrot.slane %v516_v29, %v2305_v9  ;;  %v525_v36 = vrot.slane %v516_v29, %v2307_v10  ;;  %s2037_s12 = smov 34   ;;  %s2038_s11 = smov 32  }
  0x62   : > { %v545_v37 = vrot.slane %v540_v30, %v2305_v9  ;;  %v549_v38 = vrot.slane %v540_v30, %v2307_v10  ;;  %vm562_vm4 = vcmp.lt.s32.totalorder %v2303_v8, 127  ;;  %v571_v46 = vrot.slane %v566_v39, %v2305_v9  ;;  %s2039_s30 = smov 30   ;;  %s2040_s14 = smov 2  }
  0x63   : > { %510 = vrot.lane.b32.xlu1 %v2267_v1, %s2030_s27  ;;  %508 = vrot.lane.b32.xlu0 %v2262_v0, %s2030_s27  ;;  %v575_v47 = vrot.slane %v566_v39, %v2307_v10  ;;  %vm586_vm5 = vcmp.lt.s32.totalorder %v2303_v8, 113  ;;  %v599_v6 = vrot.slane %v590_v60, %v2307_v10  ;;  %vm610_vm6 = vcmp.lt.s32.totalorder %v2303_v8, 112  ;;  %s2041_s29 = smov 126  }
  0x64   : > { %v619_v7 = vrot.slane %v614_v61, %v2305_v9  ;;  %v623_v11 = vrot.slane %v614_v61, %v2307_v10  ;;  %vm634_vm7 = vcmp.lt.s32.totalorder %v2303_v8, 111  ;;  %vm789_vm12 = vcmp.lt.s32.totalorder %v2303_v8, 34 }
  0x65   : > { %vm813_vm13 = vcmp.lt.s32.totalorder %v2303_v8, 32  ;;  %vm837_vm14 = vcmp.lt.s32.totalorder %v2303_v8, 30  ;;  %vm861_vm15 = vcmp.lt.s32.totalorder %v2303_v8, 2 }
  0x67   : > { %534 = vrot.lane.b32.xlu1 %v2267_v1, %s2031_s16  ;;  %532 = vrot.lane.b32.xlu0 %v2262_v0, %s2031_s16  ;;  %s2042_s16 = smov 98  }
  0x6b   : > { %560 = vrot.lane.b32.xlu1 %v2267_v1, %s2032_s17  ;;  %558 = vrot.lane.b32.xlu0 %v2262_v0, %s2032_s17  ;;  %s2043_s17 = smov 96  }
  0x6f   : > { %584 = vrot.lane.b32.xlu1 %v2267_v1, %s2033_s18  ;;  %582 = vrot.lane.b32.xlu0 %v2262_v0, %s2033_s18 }
  0x73   : > { %608 = vrot.lane.b32.xlu1 %v2267_v1, %s2035_s26  ;;  %606 = vrot.lane.b32.xlu0 %v2262_v0, %s2035_s26  ;;  %s2044_s26 = smov 94  }
  0x77   : > { %632 = vrot.lane.b32.xlu1 %v2267_v1, %s2036_s13  ;;  %630 = vrot.lane.b32.xlu0 %v2262_v0, %s2036_s13 }
  0x7b   : > { %764 = vperm.xlu1 %1844, %v761_v3   ;;  %688 = vperm.xlu0 %1843, %v672_v4  }
  0x7f   : > { %772 = vperm.xlu1 %1844, %v769_v5   ;;  %v595_v5 = vrot.slane %v590_v60, %v2305_v9 }
  0xcd   : > { %v485_v13 = vpop.permute.xlu1 %484  ;;  %v460_v14 = vpop.permute.xlu0 %459 }
  0xd1   : > { %v487_v19 = vpop.permute.xlu1 %486  ;;  %v462_v20 = vpop.permute.xlu0 %461 }
  0xd2   : > { %v489_v21 = vsel %vm488_vm0, %v485_v13, %v487_v19  ;;  %v490_v22 = vsel %vm488_vm0, %v487_v19, %v485_v13  ;;  %v466_v23 = vsel %vm465_vm1, %v460_v14, %v462_v20  ;;  %v467_v24 = vsel %vm465_vm1, %v462_v20, %v460_v14 }
  0xd3   : > { %v504_v25 = vmul.f32 %v497_v15, %v490_v22  ;;  %v480_v26 = vmul.f32 %v473_v16, %v467_v24  ;;  %v481_v27 = vmul.f32 %v477_v17, %v466_v23  ;;  %v505_v28 = vmul.f32 %v501_v18, %v489_v21 }
  0xd4   : > { %v643_v17 = vrot.slane %v638_v12, %v2305_v9  ;;  %v647_v18 = vrot.slane %v638_v12, %v2307_v10  ;;  %vm887_vm0 = vcmp.lt.s32.totalorder %v2303_v8, 126 }
  0xd5   : > { %v511_v31 = vpop.permute.xlu1 %510  ;;  %v509_v32 = vpop.permute.xlu0 %508  ;;  %v677_v33 = vpack.c.bf16 %v505_v28, %v481_v27  ;;  %v676_v34 = vpack.c.bf16 %v504_v25, %v480_v26 }
  0xd6   : > { %v513_v40 = vsel %vm512_vm2, %v509_v32, %v511_v31  ;;  %v514_v41 = vsel %vm512_vm2, %v511_v31, %v509_v32 }
  0xd7   : > { %712 = vmatprep.subr.bf16.mxu1 %v677_v33  ;;  %v528_v48 = vmul.f32 %v521_v35, %v514_v41  ;;  %v529_v49 = vmul.f32 %v525_v36, %v513_v40 }
  0xd8   : > { %713 = vmatpush1.bf16.msra.mxu1 %v676_v34  ;;  %v1845_v34 = vld [vmem:[%s2613_s1] sm:$0xff]  }
  0xd9   : > { %v535_v42 = vpop.permute.xlu1 %534  ;;  %v533_v43 = vpop.permute.xlu0 %532 }
  0xda   : > { %v537_v44 = vsel %vm536_vm3, %v533_v43, %v535_v42  ;;  %v538_v45 = vsel %vm536_vm3, %v535_v42, %v533_v43  ;;  %vm911_vm3 = vcmp.lt.s32.totalorder %v2303_v8, 98 }
  0xdb   : > { %v552_v50 = vmul.f32 %v545_v37, %v538_v45  ;;  %v553_v51 = vmul.f32 %v549_v38, %v537_v44 }
  0xdd   : > { %v561_v52 = vpop.permute.xlu1 %560  ;;  %v559_v53 = vpop.permute.xlu0 %558  ;;  %v679_v54 = vpack.c.bf16 %v553_v51, %v529_v49  ;;  %v678_v55 = vpack.c.bf16 %v552_v50, %v528_v48 }
  0xde   : > { %v563_v56 = vsel %vm562_vm4, %v559_v53, %v561_v52  ;;  %v564_v57 = vsel %vm562_vm4, %v561_v52, %v559_v53  ;;  %v997_v52 = vld [vmem:[%s2618_s6] sm:$0xff]  ;;  %v1704_v53 = vld [vmem:[%s2619_s7 + $0x8] sm:$0xff]  ;;  %vm935_vm4 = vcmp.lt.s32.totalorder %v2303_v8, 96 }
  0xdf   : > { %v578_v58 = vmul.f32 %v571_v46, %v563_v56  ;;  %v579_v59 = vmul.f32 %v575_v47, %v564_v57  ;;  %714 = vmatprep.subr.bf16.mxu1 %v679_v54  ;;  %v1705_v54 = vld [vmem:[%s2620_s8 + $0x8] sm:$0xff]  ;;  %v817_v57 = vld [vmem:[#allocation7 + $0x14] sm:$0x3] }
  0xe0   : > { %715 = vmatpush1.bf16.msra.mxu1 %v678_v55  ;;  %v793_v55 = vld [vmem:[#allocation7 + $0x12] sm:$0x3]  ;;  %v822_v61 = vrot.slane %v817_v57, %v2305_v9 }
  0xe1   : > { %v585_v62 = vpop.permute.xlu1 %584  ;;  %v583_v63 = vpop.permute.xlu0 %582  ;;  %v681_v3 = vpack.c.bf16 %v579_v59, %v2267_v1  ;;  %v680_v4 = vpack.c.bf16 %v578_v58, %v2262_v0  ;;  %v798_v59 = vrot.slane %v793_v55, %v2305_v9  ;;  %v802_v60 = vrot.slane %v793_v55, %v2307_v10 }
  0xe2   : > { %v587_v13 = vsel %vm586_vm5, %v583_v63, %v585_v62  ;;  %v588_v1 = vsel %vm586_vm5, %v585_v62, %v583_v63  ;;  %v826_v62 = vrot.slane %v817_v57, %v2307_v10 }
  0xe3   : > { %716 = vmatprep.subr.bf16.mxu1 %v681_v3  ;;  %v602_v19 = vmul.f32 %v595_v5, %v587_v13  ;;  %v603_v20 = vmul.f32 %v599_v6, %v588_v1 }
  0xe4   : > { %717 = vmatpush1.bf16.msra.mxu1 %v680_v4 }
  0xe5   : > { %v609_v0 = vpop.permute.xlu1 %608  ;;  %v607_v14 = vpop.permute.xlu0 %606 }
  0xe6   : > { %v611_v15 = vsel %vm610_vm6, %v607_v14, %v609_v0  ;;  %v612_v16 = vsel %vm610_vm6, %v609_v0, %v607_v14  ;;  %v841_v0 = vld [vmem:[#allocation7 + $0x16] sm:$0x3]  ;;  %vm959_vm6 = vcmp.lt.s32.totalorder %v2303_v8, 94  ;;  %v1847_v8 = vld [vmem:[%s2622_s10] sm:$0xff]  }
  0xe7   : > { %v626_v21 = vmul.f32 %v619_v7, %v611_v15  ;;  %v627_v22 = vmul.f32 %v623_v11, %v612_v16  ;;  %v865_v15 = vld [vmem:[#allocation7 + $0x18] sm:$0x3] }
  0xe9   : > { %v633_v23 = vpop.permute.xlu1 %632  ;;  %v631_v24 = vpop.permute.xlu0 %630  ;;  %v683_v25 = vpack.c.bf16 %v627_v22, %v603_v20  ;;  %v682_v26 = vpack.c.bf16 %v626_v21, %v602_v19  ;;  %v846_v19 = vrot.slane %v841_v0, %v2305_v9  ;;  %v850_v20 = vrot.slane %v841_v0, %v2307_v10 }
  0xea   : > { %v635_v27 = vsel %vm634_vm7, %v631_v24, %v633_v23  ;;  %v636_v28 = vsel %vm634_vm7, %v633_v23, %v631_v24  ;;  %v870_v21 = vrot.slane %v865_v15, %v2305_v9  ;;  %v874_v22 = vrot.slane %v865_v15, %v2307_v10  ;;  %v891_v23 = vld [vmem:[#allocation7 + $0x1c] sm:$0x3] }
  0xeb   : > { %v650_v29 = vmul.f32 %v643_v17, %v635_v27  ;;  %v651_v30 = vmul.f32 %v647_v18, %v636_v28  ;;  %718 = vmatprep.subr.bf16.mxu1 %v683_v25 }
  0xec   : > { %719 = vmatpush1.bf16.msra.mxu1 %v682_v26 }
  0xed   : > { %v684_v31 = vpack.c.bf16 %v650_v29, %v650_v29  ;;  %v685_v32 = vpack.c.bf16 %v651_v30, %v651_v30  ;;  %v896_v30 = vrot.slane %v891_v23, %v2305_v9 }
  0xef   : > { %1700 = vmatprep.subr.msk.bf16.mxu1 %vm705_vm8, %v685_v32  ;;  %v707_v33 = vsel %vm705_vm8, %v684_v31, 0  ;;  %v900_v31 = vrot.slane %v891_v23, %v2307_v10 }
  0xf0   : > { %721 = vmatpush1.bf16.msra.mxu1 %v707_v33 }
  0xf3   : > { %1701 = vmatmul.mubr.msk.bf16.vlgmr.msra.gmra.mrb[0].mxu1 %vm701_vm9, %v1845_v34 }
  0xf4   : > { %1055 = vmatprep.mubr.bf16.mxu1 %v2034_v2 }
  0xfa   : > { %v689_v35 = vpop.permute.xlu0 %688  ;;  %v765_v37 = vpop.permute.xlu1 %764 }
  0xfe   : > { %v773_v48 = vpop.permute.xlu1 %772 }
 0x1c6   : > { %v746_v36 = vpop.f32.mrb[0].mxu1 }
 0x1c7   : > { %v747_v38 = vadd.f32 %v746_v36, %v689_v35  ;;  %v748_v39 = vpop.f32.mrb[1].mxu1 }
 0x1c8   : > { %v749_v40 = vadd.f32 %v748_v39, %v689_v35  ;;  %v2358_v41 = vpop.f32.mrb[2].mxu1 }
 0x1c9   : > { %vm755_vm10 = vcmp.ge.f32.partialorder %v747_v38, 0.0  ;;  %v757_v42 = vmul.f32 0.01, %v747_v38  ;;  %v2360_v43 = vpop.f32.mrb[3].mxu1 }
 0x1ca   : > { %vm756_vm11 = vcmp.ge.f32.partialorder %v749_v40, 0.0  ;;  %v758_v44 = vmul.f32 0.01, %v749_v40 }
 0x1cb   : > { %v759_v45 = vsel %vm755_vm10, %v747_v38, %v757_v42 }
 0x1cc   : > { %v760_v46 = vsel %vm756_vm11, %v749_v40, %v758_v44  ;;  %v767_v47 = vmul.f32 %v765_v37, %v759_v45 }
 0x1cd   : > { %v768_v49 = vmul.f32 %v765_v37, %v760_v46  ;;  %v915_v46 = vld [vmem:[#allocation7 + $0x1e] sm:$0x3] }
 0x1ce   : > { %v2362_v50 = vadd.f32 %v773_v48, %v767_v47  ;;  %v924_v55 = vrot.slane %v915_v46, %v2307_v10 }
 0x1cf   : > { %v2364_v51 = vadd.f32 %v773_v48, %v768_v49  ;;  %v939_v48 = vld [vmem:[#allocation7 + $0x20] sm:$0x3] }
 0x1d0   : > { %785 = vrot.lane.b32.xlu0 %v2362_v50, %s2037_s12  ;;  %v948_v57 = vrot.slane %v939_v48, %v2307_v10 }
 0x1d1   : > { %787 = vrot.lane.b32.xlu1 %v2364_v51, %s2037_s12 }
 0x1d4   : > { %809 = vrot.lane.b32.xlu0 %v2362_v50, %s2038_s11 }
 0x1d5   : > { %811 = vrot.lane.b32.xlu1 %v2364_v51, %s2038_s11  ;;  %s455_s11 = scalar_lea.vmem [#allocation10], %s1695_s19  ;;  %s2045_s19 = smov [#allocation10]  }
 0x1d8   : > { %833 = vrot.lane.b32.xlu0 %v2362_v50, %s2039_s30 }
 0x1d9   : > { %835 = vrot.lane.b32.xlu1 %v2364_v51, %s2039_s30  ;;  %s1739_s30 = sshll.u32 %s2133_s25, 8 }
 0x1dc   : > { %857 = vrot.lane.b32.xlu0 %v2362_v50, %s2040_s14 }
 0x1dd   : > { %859 = vrot.lane.b32.xlu1 %v2364_v51, %s2040_s14  ;;  %s1575_s14 = sshll.u32 %s455_s11, 4  ;;  %s1576_s14 = int_to_ptr.vmem [resolvable:$true] %s1575_s14 }
 0x1e0   : > { %883 = vrot.lane.b32.xlu0 %v2362_v50, %s2041_s29 }
 0x1e1   : > { %885 = vrot.lane.b32.xlu1 %v2364_v51, %s2041_s29 }
 0x1e4   : > { %907 = vrot.lane.b32.xlu0 %v2362_v50, %s2042_s16 }
 0x1e5   : > { %909 = vrot.lane.b32.xlu1 %v2364_v51, %s2042_s16  ;;  %s1548_s16 = scalar_lea.sflag [#allocation11], %s2248_s21 }
 0x1e8   : > { %931 = vrot.lane.b32.xlu0 %v2362_v50, %s2043_s17 }
 0x1e9   : > { %933 = vrot.lane.b32.xlu1 %v2364_v51, %s2043_s17  ;;  %s1920_s17 = scalar_lea.vmem %s1576_s14, 256 }
 0x1ea   : > { %p1921_p4 = scmp.ne.s32.totalorder %s1576_s14, %s1920_s17 }
 0x1ec   : > { %955 = vrot.lane.b32.xlu0 %v2362_v50, %s2044_s26  ;;  %p1922_p6 = pnand %p1921_p4, %p2203_p12 }
 0x1ed   : > { %957 = vrot.lane.b32.xlu1 %v2364_v51, %s2044_s26  ;;  %s1924_s26 = sshll.u32 %s2045_s19, 4  ;;  %s1925_s26 = int_to_ptr.vmem [resolvable:$false] %s1924_s26 }
 0x1ee   : > { %p1923_p8 = pneg %p1922_p6  ;;  %s1926_s12 = scalar_lea.vmem %s1925_s26, 512 }
 0x1ef   : > { %p1927_p10 = scmp.lt.s32.totalorder %s1576_s14, %s1925_s26  ;;  %p1928_p13 = scmp.lt.s32.totalorder %s1926_s12, %s1920_s17 }
 0x1f0   : > { %1011 = vperm.xlu0 %1843, %v997_v52  }
 0x1f1   : > { %1074 = vperm.xlu1 %1844, %v1704_v53   ;;  %p1929_p3 = por %p1928_p13, %p1927_p10 }
 0x1f3   : > { %p1930_p7 = pnand %p1929_p3, %p1923_p8 }
 0x1f4   : > { %1083 = vperm.xlu0 %1843, %v1705_v54   ;;  %v920_v54 = vrot.slane %v915_v46, %v2305_v9  ;;  %v1713_v46 = vld [vmem:[%s2619_s7 + $0x18] sm:$0xff] }
 0x242   : > { %v786_v56 = vpop.permute.xlu0 %785 }
 0x243   : > { %v788_v58 = vpop.permute.xlu1 %787 }
 0x244   : > { %v790_v63 = vsel %vm789_vm12, %v786_v56, %v788_v58  ;;  %v791_v3 = vsel %vm789_vm12, %v788_v58, %v786_v56  ;;  %v944_v56 = vrot.slane %v939_v48, %v2305_v9  ;;  %v963_v58 = vld [vmem:[#allocation7 + $0x22] sm:$0x3] }
 0x245   : > { %v805_v11 = vmul.f32 %v798_v59, %v791_v3  ;;  %v806_v12 = vmul.f32 %v802_v60, %v790_v63 }
 0x246   : > { %v810_v4 = vpop.permute.xlu0 %809 }
 0x247   : > { %v812_v5 = vpop.permute.xlu1 %811 }
 0x248   : > { %v814_v6 = vsel %vm813_vm13, %v810_v4, %v812_v5  ;;  %v815_v7 = vsel %vm813_vm13, %v812_v5, %v810_v4  ;;  %v968_v4 = vrot.slane %v963_v58, %v2305_v9  ;;  %v972_v5 = vrot.slane %v963_v58, %v2307_v10 }
 0x249   : > { %v829_v13 = vmul.f32 %v822_v61, %v815_v7  ;;  %v830_v1 = vmul.f32 %v826_v62, %v814_v6 }
 0x24a   : > { %v834_v14 = vpop.permute.xlu0 %833 }
 0x24b   : > { %v999_v16 = vpack.c.bf16 %v829_v13, %v805_v11  ;;  %v836_v17 = vpop.permute.xlu1 %835  ;;  %v1000_v18 = vpack.c.bf16 %v830_v1, %v806_v12 }
 0x24c   : > { %v838_v24 = vsel %vm837_vm14, %v834_v14, %v836_v17  ;;  %v839_v25 = vsel %vm837_vm14, %v836_v17, %v834_v14 }
 0x24d   : > { %1023 = vmatprep.subr.bf16.mxu1 %v1000_v18  ;;  %v853_v32 = vmul.f32 %v846_v19, %v839_v25  ;;  %v854_v33 = vmul.f32 %v850_v20, %v838_v24 }
 0x24e   : > { %1024 = vmatpush1.bf16.msra.mxu1 %v999_v16  ;;  %v858_v26 = vpop.permute.xlu0 %857 }
 0x24f   : > { %v860_v27 = vpop.permute.xlu1 %859 }
 0x250   : > { %v862_v28 = vsel %vm861_vm15, %v858_v26, %v860_v27  ;;  %v863_v29 = vsel %vm861_vm15, %v860_v27, %v858_v26 }
 0x251   : > { %v877_v34 = vmul.f32 %v870_v21, %v863_v29  ;;  %v878_v35 = vmul.f32 %v874_v22, %v862_v28  ;;  %v998_v22 = vld [vmem:[%s2614_s2] sm:$0xf] }
 0x252   : > { %v884_v36 = vpop.permute.xlu0 %883 }
 0x253   : > { %v1001_v37 = vpack.c.bf16 %v877_v34, %v853_v32  ;;  %v886_v38 = vpop.permute.xlu1 %885  ;;  %v1002_v39 = vpack.c.bf16 %v878_v35, %v854_v33 }
 0x254   : > { %v888_v40 = vsel %vm887_vm0, %v884_v36, %v886_v38  ;;  %v889_v42 = vsel %vm887_vm0, %v886_v38, %v884_v36 }
 0x255   : > { %v903_v44 = vmul.f32 %v896_v30, %v888_v40  ;;  %v904_v45 = vmul.f32 %v900_v31, %v889_v42  ;;  %1025 = vmatprep.subr.bf16.mxu1 %v1002_v39  ;;  %v1709_v42 = vld [vmem:[%s2620_s8 + $0x10] sm:$0xff] }
 0x256   : > { %1026 = vmatpush1.bf16.msra.mxu1 %v1001_v37  ;;  %v908_v47 = vpop.permute.xlu0 %907 }
 0x257   : > { %v1003_v49 = vpack.c.bf16 %v903_v44, %v2362_v50  ;;  %v910_v52 = vpop.permute.xlu1 %909  ;;  %v1004_v53 = vpack.c.bf16 %v904_v45, %v2364_v51  ;;  %v1710_v44 = vld [vmem:[%s2618_s6 + $0x10] sm:$0xff]  ;;  %v673_v45 = vld [vmem:[%s2617_s5 + $0x8] sm:$0xff] }
 0x258   : > { %v912_v59 = vsel %vm911_vm3, %v908_v47, %v910_v52  ;;  %v913_v60 = vsel %vm911_vm3, %v910_v52, %v908_v47  ;;  %v1714_v47 = vld [vmem:[%s2620_s8 + $0x18] sm:$0xff]  ;;  %v1120_v52 = vld [vmem:[#allocation7 + $0x26] sm:$0x3] }
 0x259   : > { %1027 = vmatprep.subr.bf16.mxu1 %v1004_v53  ;;  %v927_v6 = vmul.f32 %v920_v54, %v912_v59  ;;  %v928_v7 = vmul.f32 %v924_v55, %v913_v60  ;;  %v1125_v55 = vrot.slane %v1120_v52, %v2305_v9 }
 0x25a   : > { %1028 = vmatpush1.bf16.msra.mxu1 %v1003_v49  ;;  %v932_v61 = vpop.permute.xlu0 %931  ;;  %v1097_v49 = vld [vmem:[#allocation7 + $0x24] sm:$0x3] }
 0x25b   : > { %v934_v62 = vpop.permute.xlu1 %933  ;;  %v1102_v54 = vrot.slane %v1097_v49, %v2305_v9 }
 0x25c   : > { %v936_v63 = vsel %vm935_vm4, %v932_v61, %v934_v62  ;;  %v937_v3 = vsel %vm935_vm4, %v934_v62, %v932_v61 }
 0x25d   : > { %v951_v11 = vmul.f32 %v944_v56, %v936_v63  ;;  %v952_v12 = vmul.f32 %v948_v57, %v937_v3  ;;  %v1106_v56 = vrot.slane %v1097_v49, %v2307_v10  ;;  %v1129_v57 = vrot.slane %v1120_v52, %v2307_v10 }
 0x25e   : > { %v956_v13 = vpop.permute.xlu0 %955 }
 0x25f   : > { %v1005_v1 = vpack.c.bf16 %v951_v11, %v927_v6  ;;  %v958_v0 = vpop.permute.xlu1 %957  ;;  %v1006_v14 = vpack.c.bf16 %v952_v12, %v928_v7  ;;  %v1143_v11 = vld [vmem:[#allocation7 + $0x28] sm:$0x3]  ;;  %v1166_v12 = vld [vmem:[#allocation7 + $0x2a] sm:$0x3] }
 0x260   : > { %v960_v15 = vsel %vm959_vm6, %v956_v13, %v958_v0  ;;  %v961_v16 = vsel %vm959_vm6, %v958_v0, %v956_v13 }
 0x261   : > { %v975_v17 = vmul.f32 %v968_v4, %v960_v15  ;;  %v976_v18 = vmul.f32 %v972_v5, %v961_v16  ;;  %1029 = vmatprep.subr.bf16.mxu1 %v1006_v14  ;;  %v1148_v14 = vrot.slane %v1143_v11, %v2305_v9  ;;  %v1152_v15 = vrot.slane %v1143_v11, %v2307_v10 }
 0x262   : > { %1030 = vmatpush1.bf16.msra.mxu1 %v1005_v1  ;;  %v1171_v16 = vrot.slane %v1166_v12, %v2305_v9 }
 0x263   : > { %v1007_v19 = vpack.c.bf16 %v975_v17, %v975_v17  ;;  %v1008_v20 = vpack.c.bf16 %v976_v18, %v976_v18  ;;  %v1175_v17 = vrot.slane %v1166_v12, %v2307_v10 }
 0x265   : > { %1702 = vmatprep.subr.msk.bf16.mxu1 %vm705_vm8, %v1008_v20  ;;  %v1018_v21 = vsel %vm705_vm8, %v1007_v19, 0 }
 0x266   : > { %1032 = vmatpush1.bf16.msra.mxu1 %v1018_v21 }
 0x269   : > { %1703 = vmatmul.mubr.msk.bf16.vlgmr.msra.gmra.mrb[4].mxu1 %vm701_vm9, %v998_v22 }
 0x26a   : > { %1333 = vmatprep.mubr.bf16.mxu1 %v2034_v2 }
 0x26f   : > { %v1012_v23 = vpop.permute.xlu0 %1011 }
 0x270   : > { %v1075_v32 = vpop.permute.xlu1 %1074 }
 0x273   : > { %v1084_v36 = vpop.permute.xlu0 %1083 }
 0x33c   : > { %v1057_v24 = vpop.f32.mrb[4].mxu1 }
 0x33d   : > { %v1058_v25 = vadd.f32 %v1057_v24, %v1012_v23  ;;  %v1059_v26 = vpop.f32.mrb[5].mxu1 }
 0x33e   : > { %v1060_v27 = vadd.f32 %v1059_v26, %v1012_v23  ;;  %v1061_v28 = vpop.f32.mrb[6].mxu1 }
 0x33f   : > { %vm1064_vm10 = vcmp.ge.f32.partialorder %v1058_v25, 0.0  ;;  %v1066_v29 = vmul.f32 0.01, %v1058_v25  ;;  %v1062_v30 = vpop.f32.mrb[7].mxu1  ;;  %v1192_v28 = vld [vmem:[%s2615_s3] sm:$0xf] }
 0x340   : > { %vm1065_vm11 = vcmp.ge.f32.partialorder %v1060_v27, 0.0  ;;  %v1067_v31 = vmul.f32 0.01, %v1060_v27  ;;  %v1848_v30 = vld [vmem:[%s2622_s10 + $0x48] sm:$0xff]  }
 0x341   : > { %v1068_v33 = vsel %vm1064_vm10, %v1058_v25, %v1066_v29  ;;  %v1846_v29 = vld [vmem:[%s2622_s10 + $0x40] sm:$0xff]  }
 0x342   : > { %v1077_v34 = vmul.f32 %v1075_v32, %v1068_v33  ;;  %v1069_v35 = vsel %vm1065_vm11, %v1060_v27, %v1067_v31  ;;  %v1849_v31 = vld [vmem:[%s2622_s10 + $0x8] sm:$0xff]   ;;  %v1851_v33 = vld [vmem:[%s2622_s10 + $0x10] sm:$0xff]  }
 0x343   : > { %v1078_v37 = vmul.f32 %v1075_v32, %v1069_v35  ;;  %v1850_v32 = vld [vmem:[%s2622_s10 + $0x50] sm:$0xff]   ;;  %v1853_v35 = vld [vmem:[%s2622_s10 + $0x18] sm:$0xff]  }
 0x344   : > { %v1086_v38 = vadd.f32 %v1084_v36, %v1077_v34  ;;  %v1852_v34 = vld [vmem:[%s2622_s10 + $0x58] sm:$0xff]  }
 0x345   : > { %v1087_v39 = vadd.f32 %v1084_v36, %v1078_v37 }
 0x346   : > { %1090 = vrot.lane.b32.xlu1 %v1086_v38, %s2029_s28  ;;  %v1282_v40 = vpack.c.bf16 %v1086_v38, %v2362_v50  ;;  %v1708_v50 = vld [vmem:[%s2619_s7 + $0x10] sm:$0xff] }
 0x347   : > { %1092 = vrot.lane.b32.xlu0 %v1087_v39, %s2029_s28  ;;  %v1283_v2 = vpack.c.bf16 %v1087_v39, %v2364_v51  ;;  %v1706_v51 = vld [vmem:[%s2618_s6 + $0x8] sm:$0xff] }
 0x349   : > { %1301 = vmatprep.subr.bf16.mxu1 %v1283_v2 }
 0x34a   : > { %1113 = vrot.lane.b32.xlu1 %v1086_v38, %s2030_s27  ;;  %1302 = vmatpush1.bf16.msra.mxu1 %v1282_v40 }
 0x34b   : > { %1115 = vrot.lane.b32.xlu0 %v1087_v39, %s2030_s27 }
 0x34e   : > { %1136 = vrot.lane.b32.xlu1 %v1086_v38, %s2033_s18 }
 0x34f   : > { %1138 = vrot.lane.b32.xlu0 %v1087_v39, %s2033_s18  ;;  %s2650_s18 = sld [smem:[#allocation20_spill]] }
 0x352   : > { %1159 = vrot.lane.b32.xlu1 %v1086_v38, %s2036_s13 }
 0x353   : > { %1161 = vrot.lane.b32.xlu0 %v1087_v39, %s2036_s13 }
 0x355   : > { %s2543_s13 = scalar_lea.hbm %s2650_s18, %s1739_s30 }
 0x356   : > { %1199 = vperm.xlu1 %1844, %v1706_v51  }
 0x357   : > { %1257 = vperm.xlu0 %1843, %v1708_v50  }
 0x35a   : > { %1266 = vperm.xlu1 %1844, %v1709_v42  }
 0x35b   : > { %1288 = vperm.xlu0 %1843, %v1710_v44  }
 0x35e   : > { %693 = vperm.xlu1 %1844, %v673_v45  }
 0x35f   : > { %1352 = vperm.xlu0 %1843, %v1713_v46  }
 0x362   : > { %1361 = vperm.xlu1 %1844, %v1714_v47  }
 0x3b8   : > { %v1091_v48 = vpop.permute.xlu1 %1090 }
 0x3b9   : > { %v1093_v53 = vpop.permute.xlu0 %1092 }
 0x3ba   : > { %v1094_v58 = vsel %vm465_vm1, %v1091_v48, %v1093_v53  ;;  %v1095_v59 = vsel %vm465_vm1, %v1093_v53, %v1091_v48  ;;  %vm1202_vm1 = vcmask 261120  }
 0x3bb   : > { %v1109_v3 = vmul.f32 %v1102_v54, %v1095_v59  ;;  %v1110_v5 = vmul.f32 %v1106_v56, %v1094_v58  ;;  %v1854_v58 = vld [vmem:[%s2622_s10 + $0x60] sm:$0xff]  }
 0x3bc   : > { %v1114_v60 = vpop.permute.xlu1 %1113  ;;  %v1855_v59 = vld [vmem:[%s2622_s10 + $0x20] sm:$0xff]  }
 0x3bd   : > { %v1116_v61 = vpop.permute.xlu0 %1115 }
 0x3be   : > { %v1117_v62 = vsel %vm512_vm2, %v1114_v60, %v1116_v61  ;;  %v1118_v63 = vsel %vm512_vm2, %v1116_v61, %v1114_v60  ;;  %v1856_v60 = vld [vmem:[%s2622_s10 + $0x68] sm:$0xff]  }
 0x3bf   : > { %v1132_v4 = vmul.f32 %v1125_v55, %v1118_v63  ;;  %v1133_v6 = vmul.f32 %v1129_v57, %v1117_v62  ;;  %v1281_v57 = vld [vmem:[%s2616_s4] sm:$0xf]  ;;  %v1857_v61 = vld [vmem:[%s2622_s10 + $0x28] sm:$0xff]   ;;  %v1858_v62 = vld [vmem:[%s2622_s10 + $0x70] sm:$0xff]  }
 0x3c0   : > { %v1137_v7 = vpop.permute.xlu1 %1136  ;;  %v1859_v63 = vld [vmem:[%s2622_s10 + $0x30] sm:$0xff]  }
 0x3c1   : > { %v1139_v13 = vpop.permute.xlu0 %1138  ;;  %v1194_v1 = vpack.c.bf16 %v1133_v6, %v1110_v5  ;;  %v1193_v0 = vpack.c.bf16 %v1132_v4, %v1109_v3  ;;  %v1860_v3 = vld [vmem:[%s2622_s10 + $0x78] sm:$0xff]  }
 0x3c2   : > { %v1140_v18 = vsel %vm586_vm5, %v1137_v7, %v1139_v13  ;;  %v1141_v19 = vsel %vm586_vm5, %v1139_v13, %v1137_v7  ;;  %v1861_v4 = vld [vmem:[%s2622_s10 + $0x38] sm:$0xff]  }
 0x3c3   : > { %1206 = vmatprep.subr.bf16.mxu0 %v1194_v1  ;;  %v1155_v24 = vmul.f32 %v1148_v14, %v1140_v18  ;;  %v1156_v25 = vmul.f32 %v1152_v15, %v1141_v19 }
 0x3c4   : > { %1207 = vmatpush1.bf16.msra.mxu0 %v1193_v0  ;;  %v1160_v20 = vpop.permute.xlu1 %1159 }
 0x3c5   : > { %v1162_v21 = vpop.permute.xlu0 %1161 }
 0x3c6   : > { %v1163_v22 = vsel %vm634_vm7, %v1160_v20, %v1162_v21  ;;  %v1164_v23 = vsel %vm634_vm7, %v1162_v21, %v1160_v20  ;;  %vm1291_vm7 = vcmask 195584  }
 0x3c7   : > { %v1178_v9 = vmul.f32 %v1171_v16, %v1163_v22  ;;  %v1179_v26 = vmul.f32 %v1175_v17, %v1164_v23 }
 0x3c9   : > { %v1196_v10 = vpack.c.bf16 %v1179_v26, %v1156_v25  ;;  %v1195_v27 = vpack.c.bf16 %v1178_v9, %v1155_v24 }
 0x3cb   : > { %1208 = vmatprep.subr.bf16.mxu0 %v1196_v10 }
 0x3cc   : > { %1209 = vmatpush1.bf16.msra.mxu0 %v1195_v27 }
 0x3cd   : > { %1740 = vmatprep.subr.bf16.mxu0 %v1846_v29 }
 0x3cf   : > { %1707 = vmatmul.mubr.msk.bf16.vlgmr.msra.gmra.mrb[0].mxu0 %vm1202_vm1, %v1192_v28 }
 0x3d0   : > { %1741 = vmatpush3.bf16.msra.mxu0 %v1847_v8 }
 0x3d1   : > { %1742 = vmatprep.subr.bf16.mxu0 %v1848_v30 }
 0x3d4   : > { %1743 = vmatpush3.bf16.msra.mxu0 %v1849_v31 }
 0x3d5   : > { %1744 = vmatprep.subr.bf16.mxu0 %v1850_v32  ;;  %v1200_v36 = vpop.permute.xlu1 %1199 }
 0x3d6   : > { %v1258_v44 = vpop.permute.xlu0 %1257 }
 0x3d8   : > { %1745 = vmatpush3.bf16.msra.mxu0 %v1851_v33 }
 0x3d9   : > { %1746 = vmatprep.subr.bf16.mxu0 %v1852_v34  ;;  %v1267_v48 = vpop.permute.xlu1 %1266 }
 0x3da   : > { %v1289_v6 = vpop.permute.xlu0 %1288 }
 0x3dc   : > { %1747 = vmatpush3.bf16.msra.mxu0 %v1853_v35 }
 0x3dd   : > { %1748 = vmatprep.subr.bf16.mxu0 %v1854_v58  ;;  %v694_v5 = vpop.permute.xlu1 %693 }
 0x3de   : > { %v751_v11 = vadd.f32 %v2358_v41, %v694_v5  ;;  %v753_v1 = vadd.f32 %v2360_v43, %v694_v5  ;;  %v1353_v19 = vpop.permute.xlu0 %1352 }
 0x3e0   : > { %1749 = vmatpush3.bf16.msra.mxu0 %v1855_v59  ;;  %v779_v18 = vmul.f32 0.01, %v751_v11  ;;  %vm777_vm12 = vcmp.ge.f32.partialorder %v751_v11, 0.0  ;;  %v780_v21 = vmul.f32 0.01, %v753_v1  ;;  %vm778_vm13 = vcmp.ge.f32.partialorder %v753_v1, 0.0 }
 0x3e1   : > { %1750 = vmatprep.subr.bf16.mxu0 %v1856_v60  ;;  %v1362_v41 = vpop.permute.xlu1 %1361 }
 0x3e2   : > { %v781_v25 = vsel %vm777_vm12, %v751_v11, %v779_v18  ;;  %v782_v26 = vsel %vm778_vm13, %v753_v1, %v780_v21 }
 0x3e4   : > { %1751 = vmatpush3.bf16.msra.mxu0 %v1857_v61 }
 0x3e5   : > { %1752 = vmatprep.subr.bf16.mxu0 %v1858_v62 }
 0x3e8   : > { %1753 = vmatpush3.bf16.msra.mxu0 %v1859_v63 }
 0x3e9   : > { %1754 = vmatprep.subr.bf16.mxu0 %v1860_v3 }
 0x3ec   : > { %1755 = vmatpush3.bf16.msra.mxu0 %v1861_v4 }
 0x4a2   : > { %v1240_v37 = vpop.f32.mrb[0].mxu0 }
 0x4a3   : > { %v1241_v38 = vadd.f32 %v1240_v37, %v1200_v36  ;;  %v1242_v39 = vpop.f32.mrb[1].mxu0 }
 0x4a4   : > { %v1243_v2 = vadd.f32 %v1242_v39, %v1200_v36  ;;  %v1244_v40 = vpop.f32.mrb[2].mxu0 }
 0x4a5   : > { %vm1247_vm2 = vcmp.ge.f32.partialorder %v1241_v38, 0.0  ;;  %v1249_v51 = vmul.f32 0.01, %v1241_v38  ;;  %v1245_v50 = vpop.f32.mrb[3].mxu0 }
 0x4a6   : > { %vm1248_vm5 = vcmp.ge.f32.partialorder %v1243_v2, 0.0  ;;  %v1250_v42 = vmul.f32 0.01, %v1243_v2 }
 0x4a7   : > { %v1251_v45 = vsel %vm1247_vm2, %v1241_v38, %v1249_v51 }
 0x4a8   : > { %v1260_v46 = vmul.f32 %v1258_v44, %v1251_v45  ;;  %v1252_v47 = vsel %vm1248_vm5, %v1243_v2, %v1250_v42 }
 0x4a9   : > { %v1261_v49 = vmul.f32 %v1258_v44, %v1252_v47 }
 0x4aa   : > { %v1269_v52 = vadd.f32 %v1267_v48, %v1260_v46 }
 0x4ab   : > { %v1270_v53 = vadd.f32 %v1267_v48, %v1261_v49 }
 0x4ac   : > { %v1284_v54 = vpack.c.bf16 %v1269_v52, %v1269_v52 }
 0x4ad   : > { %v1285_v55 = vpack.c.bf16 %v1270_v53, %v1270_v53 }
 0x4ae   : > { %v1296_v56 = vsel %vm705_vm8, %v1284_v54, 0 }
 0x4af   : > { %1711 = vmatprep.subr.msk.bf16.mxu1 %vm705_vm8, %v1285_v55 }
 0x4b0   : > { %1304 = vmatpush1.bf16.msra.mxu1 %v1296_v56 }
 0x4b3   : > { %1712 = vmatmul.mubr.msk.bf16.vlgmr.msra.gmra.mrb[8].mxu1 %vm1291_vm7, %v1281_v57 }
 0x586   : > { %v1335_v7 = vpop.f32.mrb[8].mxu1 }
 0x587   : > { %v1336_v12 = vadd.f32 %v1335_v7, %v1289_v6  ;;  %v1337_v13 = vpop.f32.mrb[9].mxu1 }
 0x588   : > { %v1338_v0 = vadd.f32 %v1337_v13, %v1289_v6  ;;  %v1339_v14 = vpop.f32.mrb[10].mxu1 }
 0x589   : > { %vm1342_vm8 = vcmp.ge.f32.partialorder %v1336_v12, 0.0  ;;  %v1344_v15 = vmul.f32 0.01, %v1336_v12  ;;  %v1340_v16 = vpop.f32.mrb[11].mxu1 }
 0x58a   : > { %vm1343_vm9 = vcmp.ge.f32.partialorder %v1338_v0, 0.0  ;;  %v1345_v17 = vmul.f32 0.01, %v1338_v0 }
 0x58b   : > { %v1346_v20 = vsel %vm1342_vm8, %v1336_v12, %v1344_v15 }
 0x58c   : > { %v1355_v22 = vmul.f32 %v1353_v19, %v1346_v20  ;;  %v1347_v23 = vsel %vm1343_vm9, %v1338_v0, %v1345_v17 }
 0x58d   : > { %v1356_v24 = vmul.f32 %v1353_v19, %v1347_v23 }
 0x58e   : > { %v1364_v43 = vadd.f32 %v1362_v41, %v1355_v22 }
 0x58f   : > { %v1365_v9 = vadd.f32 %v1362_v41, %v1356_v24 }
 0x590   : > { %v1366_v10 = vadd.f32 %v1364_v43, %v781_v25 }
 0x591   : > { %v1367_v27 = vadd.f32 %v1365_v9, %v782_v26 }
 0x592   : > { %1368 = vst [vmem:[%s455_s11] sm:$0xff] %v1366_v10  ;;  %v1370_v29 = vpack.c.bf16 %v1366_v10, %v1366_v10 }
 0x593   : > { %v1371_v28 = vpack.c.bf16 %v1367_v27, %v1367_v27  ;;  %1369 = vst [vmem:[%s455_s11 + $0x8] sm:$0xff] %v1367_v27 }
 0x595   : > { %1532 = vmatprep.mubr.bf16.mxu0 %v1371_v28 }
 0x596   : > { %1533 = vmatmul.mubr.bf16.vlgmr.msra.gmra.mrb[4].mxu0 %v1370_v29 }
 0x597   : > { %1933 = shalt.err (!%p1930_p7)
}
 0x598   : > { %s1934_s28 = scalar_lea.hbm %s2543_s13, 256  ;;  %s1938_s27 = scalar_lea.hbm %s2650_s18, 512 }
 0x599   : > { %p1935_p9 = scmp.ne.s32.totalorder %s2543_s13, %s1934_s28  ;;  %p1939_p0 = scmp.lt.u32.totalorder %s2543_s13, %s2650_s18 }
 0x59a   : > { %p1940_p11 = scmp.lt.u32.totalorder %s1938_s27, %s1934_s28  ;;  %p1942_p4 = scmp.lt.u32.totalorder %s1934_s28, %s2543_s13 }
 0x59b   : > { %p1936_p2 = pnand %p1935_p9, %p2203_p12 }
 0x59c   : > { %p1941_p1 = por %p1940_p11, %p1939_p0 }
 0x59d   : > { %p1937_p5 = pneg %p1936_p2 }
 0x59e   : > { %p1943_p6 = por %p1942_p4, %p1941_p1 }
 0x5a0   : > { %p1944_p8 = pnand %p1943_p6, %p1937_p5 }
 0x5a2   : > { %1947 = shalt.err (!%p1944_p8)
}
 0x5a3   : > { %1769 = dma.vmem_to_hbm [thread:$0]  (%p2203_p12), %s1576_s14, 256, %s2543_s13, %s1548_s16  }
 0x5a4   : > { %s1697_s17 = sshll.u32 %s2248_s21, 3  ;;  %s1733_s26 = sshll.u32 %s2133_s25, 7 }
 0x5a5   : > { %s448_s12 = scalar_lea.vmem [#allocation9], %s1697_s17  ;;  %s2651_s27 = sld [smem:[#allocation19_spill]] }
 0x5a6   : > { %s1561_s11 = sshll.u32 %s448_s12, 4  ;;  %s1543_s14 = scalar_lea.sflag [#allocation6], %s2248_s21  ;;  %s2570_s11 = int_to_ptr.vmem [resolvable:$true] %s1561_s11 }
 0x5a7   : > { %s1948_s13 = scalar_lea.vmem %s2570_s11, 128  ;;  %s2046_s25 = smov [#allocation9]  }
 0x5a8   : > { %p1949_p10 = scmp.ne.s32.totalorder %s2570_s11, %s1948_s13  ;;  %s1952_s16 = sshll.u32 %s2046_s25, 4  ;;  %s1953_s16 = int_to_ptr.vmem [resolvable:$false] %s1952_s16 }
 0x5a9   : > { %s1954_s19 = scalar_lea.vmem %s1953_s16, 256  ;;  %p1955_p7 = scmp.lt.s32.totalorder %s2570_s11, %s1953_s16 }
 0x5aa   : > { %p1950_p13 = pnand %p1949_p10, %p2203_p12  ;;  %p1956_p9 = scmp.lt.s32.totalorder %s1954_s19, %s1948_s13 }
 0x5ab   : > { %s2568_s29 = scalar_lea.hbm %s2651_s27, %s1733_s26 }
 0x5ac   : > { %p1951_p3 = pneg %p1950_p13  ;;  %p1957_p2 = por %p1956_p9, %p1955_p7 }
 0x5ae   : > { %p1958_p5 = pnand %p1957_p2, %p1951_p3 }
 0x669   : > { %v1756_v8 = vpop.f32.mrb[4].mxu0 }
 0x66a   : > { %v1757_v30 = vpop.f32.mrb[5].mxu0 }
 0x66b   : > { %v1758_v31 = vadd.f32 %v1757_v30, %v1756_v8  ;;  %v1759_v32 = vpop.f32.mrb[6].mxu0 }
 0x66c   : > { %v1760_v33 = vpop.f32.mrb[7].mxu0 }
 0x66d   : > { %v1540_v34 = vmul.f32 0.25, %v1758_v31 }
 0x66f   : > { %1541 = vst [vmem:[%s448_s12] sm:$0xff] %v1540_v34 }
 0x670   : > { %1961 = shalt.err (!%p1958_p5)
}
 0x671   : > { %s1962_s21 = scalar_lea.hbm %s2568_s29, 128  ;;  %s1966_s12 = scalar_lea.hbm %s2651_s27, 256 }
 0x672   : > { %p1963_p0 = scmp.ne.s32.totalorder %s2568_s29, %s1962_s21  ;;  %p1967_p4 = scmp.lt.u32.totalorder %s2568_s29, %s2651_s27 }
 0x673   : > { %p1968_p6 = scmp.lt.u32.totalorder %s1966_s12, %s1962_s21  ;;  %p1970_p10 = scmp.lt.u32.totalorder %s1962_s21, %s2568_s29 }
 0x674   : > { %p1964_p11 = pnand %p1963_p0, %p2203_p12 }
 0x675   : > { %p1969_p8 = por %p1968_p6, %p1967_p4 }
 0x676   : > { %p1965_p1 = pneg %p1964_p11 }
 0x677   : > { %p1971_p13 = por %p1970_p10, %p1969_p8 }
 0x679   : > { %p1972_p3 = pnand %p1971_p13, %p1965_p1 }
 0x67b   : > { %1975 = shalt.err (!%p1972_p3)
}
 0x67c   : > { %1768 = dma.vmem_to_hbm [thread:$0]  (%p2203_p12), %s2570_s11, 128, %s2568_s29, %s1543_s14  }
 0x67d PF: > { %s2652_s13 = sld [smem:[#allocation16_spill]]  ;;  %s2653_s25 = sld [smem:[#allocation17_spill]] }
 0x67e   : > { %p2655_p9 = scmp.ge.s32.totalorder %s2022_s24, 2 }
 0x683   : > { %s1587_s16 = sand.u32 1, %s2652_s13   ;;  %p2654_p7 = scmp.ne.s32.totalorder %s2653_s25, 0 }
 0x684   : > { %s1588_s19 = scalar_lea.sflag [#allocation6], %s1587_s16 }
 0x685   : > { %p1781_p2 = pnand %p2655_p9, %p2654_p7 }
 0x687   : > { %2001 = dma.done.wait (!%p1781_p2), %s1588_s19, 128  }
 0x688   : > { %2003 = vsyncadd (!%p1781_p2), %s1588_s19, 4294967168  ;;  %s1597_s21 = scalar_lea.sflag [#allocation11], %s1587_s16 }
 0x689   : > { %2005 = dma.done.wait (!%p1781_p2), %s1597_s21, 256  }
 0x68a   : > { %2007 = vsyncadd (!%p1781_p2), %s1597_s21, 4294967040  ;;  %s2656_s24 = sld [smem:[#allocation18_spill]]  ;;  %s2657_s21 = smov %s2014_s22 }
 0x68b   : > { %s2658_s22 = smov %s2018_s23  ;;  %s2659_s23 = smov %s2199_s15 }
 0x690   : > { %p30_p12 = scmp.ge.s32.totalorder %s2656_s24, 4  }
 0x692   :  { %32 = sbr.rel (!%p30_p12) target bundleno = 11 (0xb), region = 157 }
 0x699   :  { %1602 = vsyncpa [#allocation5], 1 }
 0x69a   :  { %1604 = vsyncpa [#allocation5 + $0x1], 1 }
 0x69b   :  { %1605 = vsyncpa [#allocation8], 1 }
 0x69c   :  { %1606 = vsyncpa [#allocation6], 1 }
 0x69d   :  { %1608 = vsyncpa [#allocation6 + $0x1], 1 }
 0x69e   :  { %1609 = vsyncpa [#allocation11], 1 }
 0x69f   :  { %1611 = vsyncpa [#allocation11 + $0x1], 1 }

</bundles_post_ra>
